<compile_context>
chip_gen: v5e
topology: v5e:2x2
jax: 0.10.0
libtpu: 0.0.40
codegen_flags: <defaults>
</compile_context>

<pallas_src>
import math

import jax
import jax.numpy as jnp
from jax.experimental import pallas as pl
from jax.experimental.pallas import tpu as pltpu


def modal_filter_kernel(a_ref, b_ref, pc0_ref, ps0_ref, h0_ref, out_ref):
    """One (Dt, Lt) output tile: out = sum_k A[k]*PC0[k] + B[k]*PS0[k]."""
    K = pc0_ref.shape[0]
    Dt, Lt = out_ref.shape

    A = a_ref[0]                      # (K, Dt, 1) folded per-L-tile coefficients
    B = b_ref[0]                      # (K, Dt, 1)

    acc = jnp.zeros((Dt, Lt), jnp.float32)
    for k in range(K):                # K is small & static -> unrolled, pure VPU
        acc = acc + A[k] * pc0_ref[k] + B[k] * ps0_ref[k]
    out_ref[...] = acc

    # Column 0 of the global output holds h_0; only the first L-tile touches it.
    @pl.when(pl.program_id(1) == 0)
    def _():
        out_ref[:, 0:1] = h0_ref[...]


def _lane_tile_target():
    """How many L tiles to aim for: 1 on single-TC chips (v5e/v6e), 2 on v7x."""
    try:
        kind = jax.devices()[0].device_kind.lower()
    except Exception:
        return 1
    # v7x-generation chips expose 2 TensorCores per chip -> give the megacore
    # an L axis to shard.  v5e/v6e are 1 TC/chip: extra grid steps are overhead.
    return 2 if "7" in kind else 1


def _choose_tiles(K, D, L, n_l_target, vmem_budget_bytes=24 << 20):
    """Pick (Dt, Lt).  L: full extent unless targeting 2 tiles and 128-aligned
    halves exist.  D: only tiled when the resident tables would not fit VMEM."""
    if n_l_target >= 2 and L % 256 == 0:
        Lt = L // 2
    else:
        Lt = L

    def footprint(dt):
        tables = 2 * K * dt * Lt * 4        # PC0 / PS0
        out = 2 * dt * Lt * 4               # double-buffered output tile
        ab = 2 * 2 * K * dt * 4             # double-buffered A / B blocks
        return 2 * tables + out + ab        # conservative: tables double-buffered

    Dt = D
    while footprint(Dt) > vmem_budget_bytes and Dt % 16 == 0:
        Dt //= 2                            # halves stay multiples of 8 (sublane rule)
    return Dt, Lt


def parallel_complex_modal_filter(r, theta, R_re, R_im, h_0, L):
    """Returns h of shape (d_model, L), float32."""
    K, D = r.shape
    r = r.astype(jnp.float32)
    theta = theta.astype(jnp.float32)
    R_re = R_re.astype(jnp.float32)
    R_im = R_im.astype(jnp.float32)

    Dt, Lt = _choose_tiles(K, D, L, _lane_tile_target())
    n_d = D // Dt
    n_l = L // Lt

    log_r = jnp.log(r)                                            # (K, D)

    # ---- Tile-invariant lane tables (built once; r^l folded into the trig) ----
    l = jnp.arange(Lt, dtype=jnp.float32)
    p0 = jnp.exp(log_r[:, :, None] * l)                           # r^l       (K, D, Lt)
    ang0 = theta[:, :, None] * l
    PC0 = p0 * jnp.cos(ang0)                                      # r^l cos(theta*l)
    PS0 = p0 * jnp.sin(ang0)                                      # r^l sin(theta*l)

    # ---- Per-L-tile folded coefficients, hoisted out of the kernel ----
    # Output column c = j*Lt + l holds filter tap t = c - 1 = base_j + l.
    bases = jnp.arange(n_l, dtype=jnp.float32) * float(Lt) - 1.0  # (n_l,)
    pb = jnp.exp(bases[:, None, None] * log_r[None])              # r^base    (n_l, K, D)
    angb = bases[:, None, None] * theta[None]
    cb = jnp.cos(angb)
    sb = jnp.sin(angb)
    A_all = (pb * (R_re[None] * cb - R_im[None] * sb))[..., None]   # (n_l, K, D, 1)
    B_all = (-pb * (R_re[None] * sb + R_im[None] * cb))[..., None]  # (n_l, K, D, 1)

    h0_col = h_0.reshape(D, 1).astype(jnp.float32)

    def make_call(single_buffer_const):
        const_mode = {}
        if single_buffer_const:
            # Constant-index-map blocks never change across the grid: a single
            # buffer halves their VMEM footprint (dominant consumer on v7x).
            const_mode = dict(pipeline_mode=pl.Buffered(1))
        ab_spec = pl.BlockSpec((1, K, Dt, 1), lambda i, j: (j, 0, i, 0))
        tbl_spec = pl.BlockSpec((K, Dt, Lt), lambda i, j: (0, i, 0), **const_mode)
        h0_spec = pl.BlockSpec((Dt, 1), lambda i, j: (i, 0), **const_mode)
        out_spec = pl.BlockSpec((Dt, Lt), lambda i, j: (i, j))
        return pl.pallas_call(
            modal_filter_kernel,
            out_shape=jax.ShapeDtypeStruct((D, L), jnp.float32),
            grid=(n_d, n_l),
            in_specs=[ab_spec, ab_spec, tbl_spec, tbl_spec, h0_spec],
            out_specs=out_spec,
            compiler_params=pltpu.CompilerParams(
                dimension_semantics=("parallel", "parallel")),
        )

    args = (A_all, B_all, PC0, PS0, h0_col)
    # Only use the single-buffer hint when the table index map is truly constant
    # (no D tiling); fall back gracefully if this JAX build rejects Buffered(1).
    if n_d == 1:
        try:
            return make_call(True)(*args)
        except Exception:
            pass
    return make_call(False)(*args)


def reference_forward(r, theta, R_re, R_im, h_0, L):
    """Plain-JAX replica of the PyTorch forward (complex arithmetic)."""
    p = r.astype(jnp.complex64) * jnp.exp(1j * theta.astype(jnp.complex64))   # (K, D)
    R = R_re.astype(jnp.complex64) + 1j * R_im.astype(jnp.complex64)          # (K, D)
    t = jnp.arange(L - 1, dtype=jnp.float32).reshape(L - 1, 1, 1).astype(jnp.complex64)
    h = jnp.real(jnp.sum(R * p ** t, axis=1))                                 # (L-1, D)
    h = jnp.concatenate([h_0.astype(jnp.float32), h], axis=0)                 # (L, D)
    return h.T                                                                # (D, L)


if __name__ == "__main__":
    # Module hyperparameters (small, consistent with the PyTorch __init__).
    d_model = 32
    order = 16           # -> K = order // 2 = 8
    L = 256
    r_min, r_max = 0.9, 0.999
    theta_max = 2.0 * math.pi
    K = order // 2

    # Deterministic parameter init mirroring _init_params.
    key = jax.random.PRNGKey(0)
    k1, k2, k3, k4 = jax.random.split(key, 4)
    u1 = jax.random.uniform(k1, (K, d_model), dtype=jnp.float32)
    u2 = jax.random.uniform(k2, (K, d_model), dtype=jnp.float32)
    r = r_min + (r_max - r_min) * u1
    theta = theta_max * u2
    R_re = jax.random.normal(k3, (K, d_model), dtype=jnp.float32) * math.sqrt(2.0 / order)
    R_im = jax.random.normal(k4, (K, d_model), dtype=jnp.float32) * math.sqrt(2.0 / order)
    h_0 = jnp.ones((1, d_model), dtype=jnp.float32)   # nn.Parameter(torch.ones(1, d_model))

    h = jax.block_until_ready(parallel_complex_modal_filter(r, theta, R_re, R_im, h_0, L))
    h_ref = jax.block_until_ready(reference_forward(r, theta, R_re, R_im, h_0, L))

    assert h.shape == (d_model, L) and h.dtype == jnp.float32
    assert jnp.allclose(h, h_ref, rtol=2e-3, atol=2e-3), "mismatch vs reference"

    print("KERNEL_OK")
</pallas_src>

<mosaic_0001>
module attributes {stable_mosaic.version = 11 : i64} {
  func.func @modal_filter_kernel(%arg0: i32, %arg1: i32, %arg2: memref<1x8x32x1xf32, #tpu.memory_space<vmem>>, %arg3: memref<1x8x32x1xf32, #tpu.memory_space<vmem>>, %arg4: memref<8x32x256xf32, #tpu.memory_space<vmem>>, %arg5: memref<8x32x256xf32, #tpu.memory_space<vmem>>, %arg6: memref<32x1xf32, #tpu.memory_space<vmem>>, %arg7: memref<32x256xf32, #tpu.memory_space<vmem>>) attributes {dimension_semantics = [#tpu.dimension_semantics<parallel>, #tpu.dimension_semantics<parallel>], iteration_bounds = array<i64: 1, 1>, scalar_prefetch = 0 : i64, scratch_operands = 0 : i64, tpu.core_type = #tpu.core_type<tc>, window_params = [{transform_indices = @transform_0, window_bounds = array<i64: 1, 8, 32, 1>}, {transform_indices = @transform_1, window_bounds = array<i64: 1, 8, 32, 1>}, {pipeline_mode = #tpu.pipeline_mode<synchronous>, transform_indices = @transform_2, window_bounds = array<i64: 8, 32, 256>}, {pipeline_mode = #tpu.pipeline_mode<synchronous>, transform_indices = @transform_3, window_bounds = array<i64: 8, 32, 256>}, {pipeline_mode = #tpu.pipeline_mode<synchronous>, transform_indices = @transform_4, window_bounds = array<i64: 32, 1>}, {transform_indices = @transform_5, window_bounds = array<i64: 32, 256>}]} {
    %c0 = arith.constant 0 : index
    %c0_0 = arith.constant 0 : index
    %c0_1 = arith.constant 0 : index
    %c0_2 = arith.constant 0 : index
    %0 = vector.load %arg2[%c0, %c0_0, %c0_1, %c0_2] : memref<1x8x32x1xf32, #tpu.memory_space<vmem>>, vector<1x8x32x1xf32>
    %1 = vector.shape_cast %0 : vector<1x8x32x1xf32> to vector<8x32x1xf32>
    %c0_3 = arith.constant 0 : index
    %c0_4 = arith.constant 0 : index
    %c0_5 = arith.constant 0 : index
    %c0_6 = arith.constant 0 : index
    %2 = vector.load %arg3[%c0_3, %c0_4, %c0_5, %c0_6] : memref<1x8x32x1xf32, #tpu.memory_space<vmem>>, vector<1x8x32x1xf32>
    %3 = vector.shape_cast %2 : vector<1x8x32x1xf32> to vector<8x32x1xf32>
    %cst = arith.constant 0.000000e+00 : f32
    %4 = vector.broadcast %cst : f32 to vector<32x256xf32>
    %5 = vector.extract_strided_slice %1 {offsets = [0, 0, 0], sizes = [1, 32, 1], strides = [1, 1, 1]} : vector<8x32x1xf32> to vector<1x32x1xf32>
    %6 = vector.shape_cast %5 : vector<1x32x1xf32> to vector<32x1xf32>
    %c0_7 = arith.constant 0 : index
    %c0_8 = arith.constant 0 : index
    %c0_9 = arith.constant 0 : index
    %7 = vector.load %arg4[%c0_7, %c0_8, %c0_9] : memref<8x32x256xf32, #tpu.memory_space<vmem>>, vector<1x32x256xf32>
    %8 = vector.shape_cast %7 : vector<1x32x256xf32> to vector<32x256xf32>
    %9 = vector.broadcast %6 : vector<32x1xf32> to vector<32x256xf32>
    %10 = arith.mulf %9, %8 : vector<32x256xf32>
    %11 = arith.addf %4, %10 : vector<32x256xf32>
    %12 = vector.extract_strided_slice %3 {offsets = [0, 0, 0], sizes = [1, 32, 1], strides = [1, 1, 1]} : vector<8x32x1xf32> to vector<1x32x1xf32>
    %13 = vector.shape_cast %12 : vector<1x32x1xf32> to vector<32x1xf32>
    %c0_10 = arith.constant 0 : index
    %c0_11 = arith.constant 0 : index
    %c0_12 = arith.constant 0 : index
    %14 = vector.load %arg5[%c0_10, %c0_11, %c0_12] : memref<8x32x256xf32, #tpu.memory_space<vmem>>, vector<1x32x256xf32>
    %15 = vector.shape_cast %14 : vector<1x32x256xf32> to vector<32x256xf32>
    %16 = vector.broadcast %13 : vector<32x1xf32> to vector<32x256xf32>
    %17 = arith.mulf %16, %15 : vector<32x256xf32>
    %18 = arith.addf %11, %17 : vector<32x256xf32>
    %19 = vector.extract_strided_slice %1 {offsets = [1, 0, 0], sizes = [1, 32, 1], strides = [1, 1, 1]} : vector<8x32x1xf32> to vector<1x32x1xf32>
    %20 = vector.shape_cast %19 : vector<1x32x1xf32> to vector<32x1xf32>
    %c1 = arith.constant 1 : index
    %c0_13 = arith.constant 0 : index
    %c0_14 = arith.constant 0 : index
    %21 = vector.load %arg4[%c1, %c0_13, %c0_14] : memref<8x32x256xf32, #tpu.memory_space<vmem>>, vector<1x32x256xf32>
    %22 = vector.shape_cast %21 : vector<1x32x256xf32> to vector<32x256xf32>
    %23 = vector.broadcast %20 : vector<32x1xf32> to vector<32x256xf32>
    %24 = arith.mulf %23, %22 : vector<32x256xf32>
    %25 = arith.addf %18, %24 : vector<32x256xf32>
    %26 = vector.extract_strided_slice %3 {offsets = [1, 0, 0], sizes = [1, 32, 1], strides = [1, 1, 1]} : vector<8x32x1xf32> to vector<1x32x1xf32>
    %27 = vector.shape_cast %26 : vector<1x32x1xf32> to vector<32x1xf32>
    %c1_15 = arith.constant 1 : index
    %c0_16 = arith.constant 0 : index
    %c0_17 = arith.constant 0 : index
    %28 = vector.load %arg5[%c1_15, %c0_16, %c0_17] : memref<8x32x256xf32, #tpu.memory_space<vmem>>, vector<1x32x256xf32>
    %29 = vector.shape_cast %28 : vector<1x32x256xf32> to vector<32x256xf32>
    %30 = vector.broadcast %27 : vector<32x1xf32> to vector<32x256xf32>
    %31 = arith.mulf %30, %29 : vector<32x256xf32>
    %32 = arith.addf %25, %31 : vector<32x256xf32>
    %33 = vector.extract_strided_slice %1 {offsets = [2, 0, 0], sizes = [1, 32, 1], strides = [1, 1, 1]} : vector<8x32x1xf32> to vector<1x32x1xf32>
    %34 = vector.shape_cast %33 : vector<1x32x1xf32> to vector<32x1xf32>
    %c2 = arith.constant 2 : index
    %c0_18 = arith.constant 0 : index
    %c0_19 = arith.constant 0 : index
    %35 = vector.load %arg4[%c2, %c0_18, %c0_19] : memref<8x32x256xf32, #tpu.memory_space<vmem>>, vector<1x32x256xf32>
    %36 = vector.shape_cast %35 : vector<1x32x256xf32> to vector<32x256xf32>
    %37 = vector.broadcast %34 : vector<32x1xf32> to vector<32x256xf32>
    %38 = arith.mulf %37, %36 : vector<32x256xf32>
    %39 = arith.addf %32, %38 : vector<32x256xf32>
    %40 = vector.extract_strided_slice %3 {offsets = [2, 0, 0], sizes = [1, 32, 1], strides = [1, 1, 1]} : vector<8x32x1xf32> to vector<1x32x1xf32>
    %41 = vector.shape_cast %40 : vector<1x32x1xf32> to vector<32x1xf32>
    %c2_20 = arith.constant 2 : index
    %c0_21 = arith.constant 0 : index
    %c0_22 = arith.constant 0 : index
    %42 = vector.load %arg5[%c2_20, %c0_21, %c0_22] : memref<8x32x256xf32, #tpu.memory_space<vmem>>, vector<1x32x256xf32>
    %43 = vector.shape_cast %42 : vector<1x32x256xf32> to vector<32x256xf32>
    %44 = vector.broadcast %41 : vector<32x1xf32> to vector<32x256xf32>
    %45 = arith.mulf %44, %43 : vector<32x256xf32>
    %46 = arith.addf %39, %45 : vector<32x256xf32>
    %47 = vector.extract_strided_slice %1 {offsets = [3, 0, 0], sizes = [1, 32, 1], strides = [1, 1, 1]} : vector<8x32x1xf32> to vector<1x32x1xf32>
    %48 = vector.shape_cast %47 : vector<1x32x1xf32> to vector<32x1xf32>
    %c3 = arith.constant 3 : index
    %c0_23 = arith.constant 0 : index
    %c0_24 = arith.constant 0 : index
    %49 = vector.load %arg4[%c3, %c0_23, %c0_24] : memref<8x32x256xf32, #tpu.memory_space<vmem>>, vector<1x32x256xf32>
    %50 = vector.shape_cast %49 : vector<1x32x256xf32> to vector<32x256xf32>
    %51 = vector.broadcast %48 : vector<32x1xf32> to vector<32x256xf32>
    %52 = arith.mulf %51, %50 : vector<32x256xf32>
    %53 = arith.addf %46, %52 : vector<32x256xf32>
    %54 = vector.extract_strided_slice %3 {offsets = [3, 0, 0], sizes = [1, 32, 1], strides = [1, 1, 1]} : vector<8x32x1xf32> to vector<1x32x1xf32>
    %55 = vector.shape_cast %54 : vector<1x32x1xf32> to vector<32x1xf32>
    %c3_25 = arith.constant 3 : index
    %c0_26 = arith.constant 0 : index
    %c0_27 = arith.constant 0 : index
    %56 = vector.load %arg5[%c3_25, %c0_26, %c0_27] : memref<8x32x256xf32, #tpu.memory_space<vmem>>, vector<1x32x256xf32>
    %57 = vector.shape_cast %56 : vector<1x32x256xf32> to vector<32x256xf32>
    %58 = vector.broadcast %55 : vector<32x1xf32> to vector<32x256xf32>
    %59 = arith.mulf %58, %57 : vector<32x256xf32>
    %60 = arith.addf %53, %59 : vector<32x256xf32>
    %61 = vector.extract_strided_slice %1 {offsets = [4, 0, 0], sizes = [1, 32, 1], strides = [1, 1, 1]} : vector<8x32x1xf32> to vector<1x32x1xf32>
    %62 = vector.shape_cast %61 : vector<1x32x1xf32> to vector<32x1xf32>
    %c4 = arith.constant 4 : index
    %c0_28 = arith.constant 0 : index
    %c0_29 = arith.constant 0 : index
    %63 = vector.load %arg4[%c4, %c0_28, %c0_29] : memref<8x32x256xf32, #tpu.memory_space<vmem>>, vector<1x32x256xf32>
    %64 = vector.shape_cast %63 : vector<1x32x256xf32> to vector<32x256xf32>
    %65 = vector.broadcast %62 : vector<32x1xf32> to vector<32x256xf32>
    %66 = arith.mulf %65, %64 : vector<32x256xf32>
    %67 = arith.addf %60, %66 : vector<32x256xf32>
    %68 = vector.extract_strided_slice %3 {offsets = [4, 0, 0], sizes = [1, 32, 1], strides = [1, 1, 1]} : vector<8x32x1xf32> to vector<1x32x1xf32>
    %69 = vector.shape_cast %68 : vector<1x32x1xf32> to vector<32x1xf32>
    %c4_30 = arith.constant 4 : index
    %c0_31 = arith.constant 0 : index
    %c0_32 = arith.constant 0 : index
    %70 = vector.load %arg5[%c4_30, %c0_31, %c0_32] : memref<8x32x256xf32, #tpu.memory_space<vmem>>, vector<1x32x256xf32>
    %71 = vector.shape_cast %70 : vector<1x32x256xf32> to vector<32x256xf32>
    %72 = vector.broadcast %69 : vector<32x1xf32> to vector<32x256xf32>
    %73 = arith.mulf %72, %71 : vector<32x256xf32>
    %74 = arith.addf %67, %73 : vector<32x256xf32>
    %75 = vector.extract_strided_slice %1 {offsets = [5, 0, 0], sizes = [1, 32, 1], strides = [1, 1, 1]} : vector<8x32x1xf32> to vector<1x32x1xf32>
    %76 = vector.shape_cast %75 : vector<1x32x1xf32> to vector<32x1xf32>
    %c5 = arith.constant 5 : index
    %c0_33 = arith.constant 0 : index
    %c0_34 = arith.constant 0 : index
    %77 = vector.load %arg4[%c5, %c0_33, %c0_34] : memref<8x32x256xf32, #tpu.memory_space<vmem>>, vector<1x32x256xf32>
    %78 = vector.shape_cast %77 : vector<1x32x256xf32> to vector<32x256xf32>
    %79 = vector.broadcast %76 : vector<32x1xf32> to vector<32x256xf32>
    %80 = arith.mulf %79, %78 : vector<32x256xf32>
    %81 = arith.addf %74, %80 : vector<32x256xf32>
    %82 = vector.extract_strided_slice %3 {offsets = [5, 0, 0], sizes = [1, 32, 1], strides = [1, 1, 1]} : vector<8x32x1xf32> to vector<1x32x1xf32>
    %83 = vector.shape_cast %82 : vector<1x32x1xf32> to vector<32x1xf32>
    %c5_35 = arith.constant 5 : index
    %c0_36 = arith.constant 0 : index
    %c0_37 = arith.constant 0 : index
    %84 = vector.load %arg5[%c5_35, %c0_36, %c0_37] : memref<8x32x256xf32, #tpu.memory_space<vmem>>, vector<1x32x256xf32>
    %85 = vector.shape_cast %84 : vector<1x32x256xf32> to vector<32x256xf32>
    %86 = vector.broadcast %83 : vector<32x1xf32> to vector<32x256xf32>
    %87 = arith.mulf %86, %85 : vector<32x256xf32>
    %88 = arith.addf %81, %87 : vector<32x256xf32>
    %89 = vector.extract_strided_slice %1 {offsets = [6, 0, 0], sizes = [1, 32, 1], strides = [1, 1, 1]} : vector<8x32x1xf32> to vector<1x32x1xf32>
    %90 = vector.shape_cast %89 : vector<1x32x1xf32> to vector<32x1xf32>
    %c6 = arith.constant 6 : index
    %c0_38 = arith.constant 0 : index
    %c0_39 = arith.constant 0 : index
    %91 = vector.load %arg4[%c6, %c0_38, %c0_39] : memref<8x32x256xf32, #tpu.memory_space<vmem>>, vector<1x32x256xf32>
    %92 = vector.shape_cast %91 : vector<1x32x256xf32> to vector<32x256xf32>
    %93 = vector.broadcast %90 : vector<32x1xf32> to vector<32x256xf32>
    %94 = arith.mulf %93, %92 : vector<32x256xf32>
    %95 = arith.addf %88, %94 : vector<32x256xf32>
    %96 = vector.extract_strided_slice %3 {offsets = [6, 0, 0], sizes = [1, 32, 1], strides = [1, 1, 1]} : vector<8x32x1xf32> to vector<1x32x1xf32>
    %97 = vector.shape_cast %96 : vector<1x32x1xf32> to vector<32x1xf32>
    %c6_40 = arith.constant 6 : index
    %c0_41 = arith.constant 0 : index
    %c0_42 = arith.constant 0 : index
    %98 = vector.load %arg5[%c6_40, %c0_41, %c0_42] : memref<8x32x256xf32, #tpu.memory_space<vmem>>, vector<1x32x256xf32>
    %99 = vector.shape_cast %98 : vector<1x32x256xf32> to vector<32x256xf32>
    %100 = vector.broadcast %97 : vector<32x1xf32> to vector<32x256xf32>
    %101 = arith.mulf %100, %99 : vector<32x256xf32>
    %102 = arith.addf %95, %101 : vector<32x256xf32>
    %103 = vector.extract_strided_slice %1 {offsets = [7, 0, 0], sizes = [1, 32, 1], strides = [1, 1, 1]} : vector<8x32x1xf32> to vector<1x32x1xf32>
    %104 = vector.shape_cast %103 : vector<1x32x1xf32> to vector<32x1xf32>
    %c7 = arith.constant 7 : index
    %c0_43 = arith.constant 0 : index
    %c0_44 = arith.constant 0 : index
    %105 = vector.load %arg4[%c7, %c0_43, %c0_44] : memref<8x32x256xf32, #tpu.memory_space<vmem>>, vector<1x32x256xf32>
    %106 = vector.shape_cast %105 : vector<1x32x256xf32> to vector<32x256xf32>
    %107 = vector.broadcast %104 : vector<32x1xf32> to vector<32x256xf32>
    %108 = arith.mulf %107, %106 : vector<32x256xf32>
    %109 = arith.addf %102, %108 : vector<32x256xf32>
    %110 = vector.extract_strided_slice %3 {offsets = [7, 0, 0], sizes = [1, 32, 1], strides = [1, 1, 1]} : vector<8x32x1xf32> to vector<1x32x1xf32>
    %111 = vector.shape_cast %110 : vector<1x32x1xf32> to vector<32x1xf32>
    %c7_45 = arith.constant 7 : index
    %c0_46 = arith.constant 0 : index
    %c0_47 = arith.constant 0 : index
    %112 = vector.load %arg5[%c7_45, %c0_46, %c0_47] : memref<8x32x256xf32, #tpu.memory_space<vmem>>, vector<1x32x256xf32>
    %113 = vector.shape_cast %112 : vector<1x32x256xf32> to vector<32x256xf32>
    %114 = vector.broadcast %111 : vector<32x1xf32> to vector<32x256xf32>
    %115 = arith.mulf %114, %113 : vector<32x256xf32>
    %116 = arith.addf %109, %115 : vector<32x256xf32>
    %c0_48 = arith.constant 0 : index
    %c0_49 = arith.constant 0 : index
    %117 = vector.load %arg7[%c0_48, %c0_49] : memref<32x256xf32, #tpu.memory_space<vmem>>, vector<32x256xf32>
    tpu.vector_store %arg7[%c0_48, %c0_49], %116 {strides = array<i32>} : memref<32x256xf32, #tpu.memory_space<vmem>>, vector<32x256xf32>,
    %c0_i32 = arith.constant 0 : i32
    %118 = arith.cmpi eq, %arg1, %c0_i32 : i32
    %119 = arith.extui %118 : i1 to i32
    %c0_i32_50 = arith.constant 0 : i32
    %120 = arith.cmpi ne, %119, %c0_i32_50 : i32
    scf.if %120 {
      %c0_51 = arith.constant 0 : index
      %c0_52 = arith.constant 0 : index
      %121 = vector.load %arg6[%c0_51, %c0_52] : memref<32x1xf32, #tpu.memory_space<vmem>>, vector<32x1xf32>
      %c0_53 = arith.constant 0 : index
      %c0_54 = arith.constant 0 : index
      %122 = vector.load %arg7[%c0_53, %c0_54] : memref<32x256xf32, #tpu.memory_space<vmem>>, vector<32x1xf32>
      tpu.vector_store %arg7[%c0_53, %c0_54], %121 {strides = array<i32>} : memref<32x256xf32, #tpu.memory_space<vmem>>, vector<32x1xf32>,
    } else {
    }
    return
  }
  func.func @transform_0(%arg0: i32, %arg1: i32) -> (i32, i32, i32, i32) {
    %c0_i32 = arith.constant 0 : i32
    %c0_i32_0 = arith.constant 0 : i32
    %c0_i32_1 = arith.constant 0 : i32
    return %arg1, %c0_i32, %arg0, %c0_i32_0 : i32, i32, i32, i32
  }
  func.func @transform_1(%arg0: i32, %arg1: i32) -> (i32, i32, i32, i32) {
    %c0_i32 = arith.constant 0 : i32
    %c0_i32_0 = arith.constant 0 : i32
    %c0_i32_1 = arith.constant 0 : i32
    return %arg1, %c0_i32, %arg0, %c0_i32_0 : i32, i32, i32, i32
  }
  func.func @transform_2(%arg0: i32, %arg1: i32) -> (i32, i32, i32) {
    %c0_i32 = arith.constant 0 : i32
    %c0_i32_0 = arith.constant 0 : i32
    %c0_i32_1 = arith.constant 0 : i32
    return %c0_i32, %arg0, %c0_i32_0 : i32, i32, i32
  }
  func.func @transform_3(%arg0: i32, %arg1: i32) -> (i32, i32, i32) {
    %c0_i32 = arith.constant 0 : i32
    %c0_i32_0 = arith.constant 0 : i32
    %c0_i32_1 = arith.constant 0 : i32
    return %c0_i32, %arg0, %c0_i32_0 : i32, i32, i32
  }
  func.func @transform_4(%arg0: i32, %arg1: i32) -> (i32, i32) {
    %c0_i32 = arith.constant 0 : i32
    %c0_i32_0 = arith.constant 0 : i32
    return %arg0, %c0_i32 : i32, i32
  }
  func.func @transform_5(%arg0: i32, %arg1: i32) -> (i32, i32) {
    %c0_i32 = arith.constant 0 : i32
    return %arg0, %arg1 : i32, i32
  }
}

module attributes {stable_mosaic.version = 11 : i64} {
  func.func @modal_filter_kernel(%arg0: i32, %arg1: i32, %arg2: memref<1x8x32x1xf32, #tpu.memory_space<vmem>>, %arg3: memref<1x8x32x1xf32, #tpu.memory_space<vmem>>, %arg4: memref<8x32x256xf32, #tpu.memory_space<vmem>>, %arg5: memref<8x32x256xf32, #tpu.memory_space<vmem>>, %arg6: memref<32x1xf32, #tpu.memory_space<vmem>>, %arg7: memref<32x256xf32, #tpu.memory_space<vmem>>) attributes {dimension_semantics = [#tpu.dimension_semantics<parallel>, #tpu.dimension_semantics<parallel>], iteration_bounds = array<i64: 1, 1>, scalar_prefetch = 0 : i64, scratch_operands = 0 : i64, tpu.core_type = #tpu.core_type<tc>, window_params = [{transform_indices = @transform_0, window_bounds = array<i64: 1, 8, 32, 1>}, {transform_indices = @transform_1, window_bounds = array<i64: 1, 8, 32, 1>}, {transform_indices = @transform_2, window_bounds = array<i64: 8, 32, 256>}, {transform_indices = @transform_3, window_bounds = array<i64: 8, 32, 256>}, {transform_indices = @transform_4, window_bounds = array<i64: 32, 1>}, {transform_indices = @transform_5, window_bounds = array<i64: 32, 256>}]} {
    %c0 = arith.constant 0 : index
    %c0_0 = arith.constant 0 : index
    %c0_1 = arith.constant 0 : index
    %c0_2 = arith.constant 0 : index
    %0 = vector.load %arg2[%c0, %c0_0, %c0_1, %c0_2] : memref<1x8x32x1xf32, #tpu.memory_space<vmem>>, vector<1x8x32x1xf32>
    %1 = vector.shape_cast %0 : vector<1x8x32x1xf32> to vector<8x32x1xf32>
    %c0_3 = arith.constant 0 : index
    %c0_4 = arith.constant 0 : index
    %c0_5 = arith.constant 0 : index
    %c0_6 = arith.constant 0 : index
    %2 = vector.load %arg3[%c0_3, %c0_4, %c0_5, %c0_6] : memref<1x8x32x1xf32, #tpu.memory_space<vmem>>, vector<1x8x32x1xf32>
    %3 = vector.shape_cast %2 : vector<1x8x32x1xf32> to vector<8x32x1xf32>
    %cst = arith.constant 0.000000e+00 : f32
    %4 = vector.broadcast %cst : f32 to vector<32x256xf32>
    %5 = vector.extract_strided_slice %1 {offsets = [0, 0, 0], sizes = [1, 32, 1], strides = [1, 1, 1]} : vector<8x32x1xf32> to vector<1x32x1xf32>
    %6 = vector.shape_cast %5 : vector<1x32x1xf32> to vector<32x1xf32>
    %c0_7 = arith.constant 0 : index
    %c0_8 = arith.constant 0 : index
    %c0_9 = arith.constant 0 : index
    %7 = vector.load %arg4[%c0_7, %c0_8, %c0_9] : memref<8x32x256xf32, #tpu.memory_space<vmem>>, vector<1x32x256xf32>
    %8 = vector.shape_cast %7 : vector<1x32x256xf32> to vector<32x256xf32>
    %9 = vector.broadcast %6 : vector<32x1xf32> to vector<32x256xf32>
    %10 = arith.mulf %9, %8 : vector<32x256xf32>
    %11 = arith.addf %4, %10 : vector<32x256xf32>
    %12 = vector.extract_strided_slice %3 {offsets = [0, 0, 0], sizes = [1, 32, 1], strides = [1, 1, 1]} : vector<8x32x1xf32> to vector<1x32x1xf32>
    %13 = vector.shape_cast %12 : vector<1x32x1xf32> to vector<32x1xf32>
    %c0_10 = arith.constant 0 : index
    %c0_11 = arith.constant 0 : index
    %c0_12 = arith.constant 0 : index
    %14 = vector.load %arg5[%c0_10, %c0_11, %c0_12] : memref<8x32x256xf32, #tpu.memory_space<vmem>>, vector<1x32x256xf32>
    %15 = vector.shape_cast %14 : vector<1x32x256xf32> to vector<32x256xf32>
    %16 = vector.broadcast %13 : vector<32x1xf32> to vector<32x256xf32>
    %17 = arith.mulf %16, %15 : vector<32x256xf32>
    %18 = arith.addf %11, %17 : vector<32x256xf32>
    %19 = vector.extract_strided_slice %1 {offsets = [1, 0, 0], sizes = [1, 32, 1], strides = [1, 1, 1]} : vector<8x32x1xf32> to vector<1x32x1xf32>
    %20 = vector.shape_cast %19 : vector<1x32x1xf32> to vector<32x1xf32>
    %c1 = arith.constant 1 : index
    %c0_13 = arith.constant 0 : index
    %c0_14 = arith.constant 0 : index
    %21 = vector.load %arg4[%c1, %c0_13, %c0_14] : memref<8x32x256xf32, #tpu.memory_space<vmem>>, vector<1x32x256xf32>
    %22 = vector.shape_cast %21 : vector<1x32x256xf32> to vector<32x256xf32>
    %23 = vector.broadcast %20 : vector<32x1xf32> to vector<32x256xf32>
    %24 = arith.mulf %23, %22 : vector<32x256xf32>
    %25 = arith.addf %18, %24 : vector<32x256xf32>
    %26 = vector.extract_strided_slice %3 {offsets = [1, 0, 0], sizes = [1, 32, 1], strides = [1, 1, 1]} : vector<8x32x1xf32> to vector<1x32x1xf32>
    %27 = vector.shape_cast %26 : vector<1x32x1xf32> to vector<32x1xf32>
    %c1_15 = arith.constant 1 : index
    %c0_16 = arith.constant 0 : index
    %c0_17 = arith.constant 0 : index
    %28 = vector.load %arg5[%c1_15, %c0_16, %c0_17] : memref<8x32x256xf32, #tpu.memory_space<vmem>>, vector<1x32x256xf32>
    %29 = vector.shape_cast %28 : vector<1x32x256xf32> to vector<32x256xf32>
    %30 = vector.broadcast %27 : vector<32x1xf32> to vector<32x256xf32>
    %31 = arith.mulf %30, %29 : vector<32x256xf32>
    %32 = arith.addf %25, %31 : vector<32x256xf32>
    %33 = vector.extract_strided_slice %1 {offsets = [2, 0, 0], sizes = [1, 32, 1], strides = [1, 1, 1]} : vector<8x32x1xf32> to vector<1x32x1xf32>
    %34 = vector.shape_cast %33 : vector<1x32x1xf32> to vector<32x1xf32>
    %c2 = arith.constant 2 : index
    %c0_18 = arith.constant 0 : index
    %c0_19 = arith.constant 0 : index
    %35 = vector.load %arg4[%c2, %c0_18, %c0_19] : memref<8x32x256xf32, #tpu.memory_space<vmem>>, vector<1x32x256xf32>
    %36 = vector.shape_cast %35 : vector<1x32x256xf32> to vector<32x256xf32>
    %37 = vector.broadcast %34 : vector<32x1xf32> to vector<32x256xf32>
    %38 = arith.mulf %37, %36 : vector<32x256xf32>
    %39 = arith.addf %32, %38 : vector<32x256xf32>
    %40 = vector.extract_strided_slice %3 {offsets = [2, 0, 0], sizes = [1, 32, 1], strides = [1, 1, 1]} : vector<8x32x1xf32> to vector<1x32x1xf32>
    %41 = vector.shape_cast %40 : vector<1x32x1xf32> to vector<32x1xf32>
    %c2_20 = arith.constant 2 : index
    %c0_21 = arith.constant 0 : index
    %c0_22 = arith.constant 0 : index
    %42 = vector.load %arg5[%c2_20, %c0_21, %c0_22] : memref<8x32x256xf32, #tpu.memory_space<vmem>>, vector<1x32x256xf32>
    %43 = vector.shape_cast %42 : vector<1x32x256xf32> to vector<32x256xf32>
    %44 = vector.broadcast %41 : vector<32x1xf32> to vector<32x256xf32>
    %45 = arith.mulf %44, %43 : vector<32x256xf32>
    %46 = arith.addf %39, %45 : vector<32x256xf32>
    %47 = vector.extract_strided_slice %1 {offsets = [3, 0, 0], sizes = [1, 32, 1], strides = [1, 1, 1]} : vector<8x32x1xf32> to vector<1x32x1xf32>
    %48 = vector.shape_cast %47 : vector<1x32x1xf32> to vector<32x1xf32>
    %c3 = arith.constant 3 : index
    %c0_23 = arith.constant 0 : index
    %c0_24 = arith.constant 0 : index
    %49 = vector.load %arg4[%c3, %c0_23, %c0_24] : memref<8x32x256xf32, #tpu.memory_space<vmem>>, vector<1x32x256xf32>
    %50 = vector.shape_cast %49 : vector<1x32x256xf32> to vector<32x256xf32>
    %51 = vector.broadcast %48 : vector<32x1xf32> to vector<32x256xf32>
    %52 = arith.mulf %51, %50 : vector<32x256xf32>
    %53 = arith.addf %46, %52 : vector<32x256xf32>
    %54 = vector.extract_strided_slice %3 {offsets = [3, 0, 0], sizes = [1, 32, 1], strides = [1, 1, 1]} : vector<8x32x1xf32> to vector<1x32x1xf32>
    %55 = vector.shape_cast %54 : vector<1x32x1xf32> to vector<32x1xf32>
    %c3_25 = arith.constant 3 : index
    %c0_26 = arith.constant 0 : index
    %c0_27 = arith.constant 0 : index
    %56 = vector.load %arg5[%c3_25, %c0_26, %c0_27] : memref<8x32x256xf32, #tpu.memory_space<vmem>>, vector<1x32x256xf32>
    %57 = vector.shape_cast %56 : vector<1x32x256xf32> to vector<32x256xf32>
    %58 = vector.broadcast %55 : vector<32x1xf32> to vector<32x256xf32>
    %59 = arith.mulf %58, %57 : vector<32x256xf32>
    %60 = arith.addf %53, %59 : vector<32x256xf32>
    %61 = vector.extract_strided_slice %1 {offsets = [4, 0, 0], sizes = [1, 32, 1], strides = [1, 1, 1]} : vector<8x32x1xf32> to vector<1x32x1xf32>
    %62 = vector.shape_cast %61 : vector<1x32x1xf32> to vector<32x1xf32>
    %c4 = arith.constant 4 : index
    %c0_28 = arith.constant 0 : index
    %c0_29 = arith.constant 0 : index
    %63 = vector.load %arg4[%c4, %c0_28, %c0_29] : memref<8x32x256xf32, #tpu.memory_space<vmem>>, vector<1x32x256xf32>
    %64 = vector.shape_cast %63 : vector<1x32x256xf32> to vector<32x256xf32>
    %65 = vector.broadcast %62 : vector<32x1xf32> to vector<32x256xf32>
    %66 = arith.mulf %65, %64 : vector<32x256xf32>
    %67 = arith.addf %60, %66 : vector<32x256xf32>
    %68 = vector.extract_strided_slice %3 {offsets = [4, 0, 0], sizes = [1, 32, 1], strides = [1, 1, 1]} : vector<8x32x1xf32> to vector<1x32x1xf32>
    %69 = vector.shape_cast %68 : vector<1x32x1xf32> to vector<32x1xf32>
    %c4_30 = arith.constant 4 : index
    %c0_31 = arith.constant 0 : index
    %c0_32 = arith.constant 0 : index
    %70 = vector.load %arg5[%c4_30, %c0_31, %c0_32] : memref<8x32x256xf32, #tpu.memory_space<vmem>>, vector<1x32x256xf32>
    %71 = vector.shape_cast %70 : vector<1x32x256xf32> to vector<32x256xf32>
    %72 = vector.broadcast %69 : vector<32x1xf32> to vector<32x256xf32>
    %73 = arith.mulf %72, %71 : vector<32x256xf32>
    %74 = arith.addf %67, %73 : vector<32x256xf32>
    %75 = vector.extract_strided_slice %1 {offsets = [5, 0, 0], sizes = [1, 32, 1], strides = [1, 1, 1]} : vector<8x32x1xf32> to vector<1x32x1xf32>
    %76 = vector.shape_cast %75 : vector<1x32x1xf32> to vector<32x1xf32>
    %c5 = arith.constant 5 : index
    %c0_33 = arith.constant 0 : index
    %c0_34 = arith.constant 0 : index
    %77 = vector.load %arg4[%c5, %c0_33, %c0_34] : memref<8x32x256xf32, #tpu.memory_space<vmem>>, vector<1x32x256xf32>
    %78 = vector.shape_cast %77 : vector<1x32x256xf32> to vector<32x256xf32>
    %79 = vector.broadcast %76 : vector<32x1xf32> to vector<32x256xf32>
    %80 = arith.mulf %79, %78 : vector<32x256xf32>
    %81 = arith.addf %74, %80 : vector<32x256xf32>
    %82 = vector.extract_strided_slice %3 {offsets = [5, 0, 0], sizes = [1, 32, 1], strides = [1, 1, 1]} : vector<8x32x1xf32> to vector<1x32x1xf32>
    %83 = vector.shape_cast %82 : vector<1x32x1xf32> to vector<32x1xf32>
    %c5_35 = arith.constant 5 : index
    %c0_36 = arith.constant 0 : index
    %c0_37 = arith.constant 0 : index
    %84 = vector.load %arg5[%c5_35, %c0_36, %c0_37] : memref<8x32x256xf32, #tpu.memory_space<vmem>>, vector<1x32x256xf32>
    %85 = vector.shape_cast %84 : vector<1x32x256xf32> to vector<32x256xf32>
    %86 = vector.broadcast %83 : vector<32x1xf32> to vector<32x256xf32>
    %87 = arith.mulf %86, %85 : vector<32x256xf32>
    %88 = arith.addf %81, %87 : vector<32x256xf32>
    %89 = vector.extract_strided_slice %1 {offsets = [6, 0, 0], sizes = [1, 32, 1], strides = [1, 1, 1]} : vector<8x32x1xf32> to vector<1x32x1xf32>
    %90 = vector.shape_cast %89 : vector<1x32x1xf32> to vector<32x1xf32>
    %c6 = arith.constant 6 : index
    %c0_38 = arith.constant 0 : index
    %c0_39 = arith.constant 0 : index
    %91 = vector.load %arg4[%c6, %c0_38, %c0_39] : memref<8x32x256xf32, #tpu.memory_space<vmem>>, vector<1x32x256xf32>
    %92 = vector.shape_cast %91 : vector<1x32x256xf32> to vector<32x256xf32>
    %93 = vector.broadcast %90 : vector<32x1xf32> to vector<32x256xf32>
    %94 = arith.mulf %93, %92 : vector<32x256xf32>
    %95 = arith.addf %88, %94 : vector<32x256xf32>
    %96 = vector.extract_strided_slice %3 {offsets = [6, 0, 0], sizes = [1, 32, 1], strides = [1, 1, 1]} : vector<8x32x1xf32> to vector<1x32x1xf32>
    %97 = vector.shape_cast %96 : vector<1x32x1xf32> to vector<32x1xf32>
    %c6_40 = arith.constant 6 : index
    %c0_41 = arith.constant 0 : index
    %c0_42 = arith.constant 0 : index
    %98 = vector.load %arg5[%c6_40, %c0_41, %c0_42] : memref<8x32x256xf32, #tpu.memory_space<vmem>>, vector<1x32x256xf32>
    %99 = vector.shape_cast %98 : vector<1x32x256xf32> to vector<32x256xf32>
    %100 = vector.broadcast %97 : vector<32x1xf32> to vector<32x256xf32>
    %101 = arith.mulf %100, %99 : vector<32x256xf32>
    %102 = arith.addf %95, %101 : vector<32x256xf32>
    %103 = vector.extract_strided_slice %1 {offsets = [7, 0, 0], sizes = [1, 32, 1], strides = [1, 1, 1]} : vector<8x32x1xf32> to vector<1x32x1xf32>
    %104 = vector.shape_cast %103 : vector<1x32x1xf32> to vector<32x1xf32>
    %c7 = arith.constant 7 : index
    %c0_43 = arith.constant 0 : index
    %c0_44 = arith.constant 0 : index
    %105 = vector.load %arg4[%c7, %c0_43, %c0_44] : memref<8x32x256xf32, #tpu.memory_space<vmem>>, vector<1x32x256xf32>
    %106 = vector.shape_cast %105 : vector<1x32x256xf32> to vector<32x256xf32>
    %107 = vector.broadcast %104 : vector<32x1xf32> to vector<32x256xf32>
    %108 = arith.mulf %107, %106 : vector<32x256xf32>
    %109 = arith.addf %102, %108 : vector<32x256xf32>
    %110 = vector.extract_strided_slice %3 {offsets = [7, 0, 0], sizes = [1, 32, 1], strides = [1, 1, 1]} : vector<8x32x1xf32> to vector<1x32x1xf32>
    %111 = vector.shape_cast %110 : vector<1x32x1xf32> to vector<32x1xf32>
    %c7_45 = arith.constant 7 : index
    %c0_46 = arith.constant 0 : index
    %c0_47 = arith.constant 0 : index
    %112 = vector.load %arg5[%c7_45, %c0_46, %c0_47] : memref<8x32x256xf32, #tpu.memory_space<vmem>>, vector<1x32x256xf32>
    %113 = vector.shape_cast %112 : vector<1x32x256xf32> to vector<32x256xf32>
    %114 = vector.broadcast %111 : vector<32x1xf32> to vector<32x256xf32>
    %115 = arith.mulf %114, %113 : vector<32x256xf32>
    %116 = arith.addf %109, %115 : vector<32x256xf32>
    %c0_48 = arith.constant 0 : index
    %c0_49 = arith.constant 0 : index
    %117 = vector.load %arg7[%c0_48, %c0_49] : memref<32x256xf32, #tpu.memory_space<vmem>>, vector<32x256xf32>
    tpu.vector_store %arg7[%c0_48, %c0_49], %116 {strides = array<i32>} : memref<32x256xf32, #tpu.memory_space<vmem>>, vector<32x256xf32>,
    %c0_i32 = arith.constant 0 : i32
    %118 = arith.cmpi eq, %arg1, %c0_i32 : i32
    %119 = arith.extui %118 : i1 to i32
    %c0_i32_50 = arith.constant 0 : i32
    %120 = arith.cmpi ne, %119, %c0_i32_50 : i32
    scf.if %120 {
      %c0_51 = arith.constant 0 : index
      %c0_52 = arith.constant 0 : index
      %121 = vector.load %arg6[%c0_51, %c0_52] : memref<32x1xf32, #tpu.memory_space<vmem>>, vector<32x1xf32>
      %c0_53 = arith.constant 0 : index
      %c0_54 = arith.constant 0 : index
      %122 = vector.load %arg7[%c0_53, %c0_54] : memref<32x256xf32, #tpu.memory_space<vmem>>, vector<32x1xf32>
      tpu.vector_store %arg7[%c0_53, %c0_54], %121 {strides = array<i32>} : memref<32x256xf32, #tpu.memory_space<vmem>>, vector<32x1xf32>,
    } else {
    }
    return
  }
  func.func @transform_0(%arg0: i32, %arg1: i32) -> (i32, i32, i32, i32) {
    %c0_i32 = arith.constant 0 : i32
    %c0_i32_0 = arith.constant 0 : i32
    %c0_i32_1 = arith.constant 0 : i32
    return %arg1, %c0_i32, %arg0, %c0_i32_0 : i32, i32, i32, i32
  }
  func.func @transform_1(%arg0: i32, %arg1: i32) -> (i32, i32, i32, i32) {
    %c0_i32 = arith.constant 0 : i32
    %c0_i32_0 = arith.constant 0 : i32
    %c0_i32_1 = arith.constant 0 : i32
    return %arg1, %c0_i32, %arg0, %c0_i32_0 : i32, i32, i32, i32
  }
  func.func @transform_2(%arg0: i32, %arg1: i32) -> (i32, i32, i32) {
    %c0_i32 = arith.constant 0 : i32
    %c0_i32_0 = arith.constant 0 : i32
    %c0_i32_1 = arith.constant 0 : i32
    return %c0_i32, %arg0, %c0_i32_0 : i32, i32, i32
  }
  func.func @transform_3(%arg0: i32, %arg1: i32) -> (i32, i32, i32) {
    %c0_i32 = arith.constant 0 : i32
    %c0_i32_0 = arith.constant 0 : i32
    %c0_i32_1 = arith.constant 0 : i32
    return %c0_i32, %arg0, %c0_i32_0 : i32, i32, i32
  }
  func.func @transform_4(%arg0: i32, %arg1: i32) -> (i32, i32) {
    %c0_i32 = arith.constant 0 : i32
    %c0_i32_0 = arith.constant 0 : i32
    return %arg0, %c0_i32 : i32, i32
  }
  func.func @transform_5(%arg0: i32, %arg1: i32) -> (i32, i32) {
    %c0_i32 = arith.constant 0 : i32
    return %arg0, %arg1 : i32, i32
  }
}

</mosaic_0001>

<bundles_post_ra>
// kernel: tpu_custom_call.1
= control target key start
LH: loop header
LB: loop body
LE: loop exit
PB: predicated region body
PF: predicated region fallthrough
CT: control target
= control target key end

     0   :  { %10 = vsyncpa [#allocation3], 0  ;;  %s1550_s0 = inlined_call_operand.vmem [shape: f32[1,8,32,1], index: 0, kind: input, shape index: {}]   ;;  %s1551_s1 = inlined_call_operand.vmem [shape: f32[1,8,32,1], index: 1, kind: input, shape index: {}]   ;;  %s1552_s2 = inlined_call_operand.vmem [shape: f32[8,32,256], index: 2, kind: input, shape index: {}]   ;;  %s1553_s3 = inlined_call_operand.hbm [shape: f32[8,32,256], index: 3, kind: input, shape index: {}]   ;;  %s1554_s4 = inlined_call_operand.vmem [shape: f32[32,1], index: 4, kind: input, shape index: {}]   ;;  %s1555_s5 = inlined_call_operand.hbm [shape: f32[32,256], index: 5, kind: output, shape index: {}]  }
   0x1   :  { %11 = vsyncpa [#allocation4], 0  ;;  %s22_s20 = sshll.u32 %s1553_s3, 4  ;;  %s975_s21 = smov [#allocation2]   ;;  %s23_s20 = int_to_ptr.hbm [resolvable:$true] %s22_s20 }
   0x2   :  { %s24_s22 = sshll.u32 %s975_s21, 4  ;;  %s976_s23 = smov 256   ;;  %s25_s22 = int_to_ptr.vmem [resolvable:$true] %s24_s22 }
   0x3   :  { %s977_s24 = smov 16  }
   0x4   :  { %30 = dma.hbm_to_vmem [thread:$0]  %s23_s20, 8192, %s25_s22, [#allocation3], %s976_s23, %s976_s23, %s977_s24  }
   0x5   :  { %971 = dma.done.wait [#allocation3], 8192  }
   0x6   :  { %972 = vsyncadd [#allocation3], 4294959104  ;;  %v978_v0 = vmov 0   ;;  %v69_v1 = vld [vmem:[%s1551_s1] sm:$0xff]  ;;  %v39_v2 = vld [vmem:[%s1550_s0 + $0x10] sm:$0xff]  ;;  %vm835_vm0 = vcmask 7168  }
   0x7   :  { %922 = vset.pattern.permute.xlu2 %v978_v0  ;;  %921 = vset.pattern.permute.xlu1 %v978_v0  ;;  %v37_v3 = vld [vmem:[%s1550_s0] sm:$0xff]  ;;  %v70_v4 = vld [vmem:[%s1551_s1 + $0x8] sm:$0xff]  ;;  %v40_v5 = vld [vmem:[%s1550_s0 + $0x18] sm:$0xff]  ;;  %s846_s15 = sshll.u32 %s1555_s5, 4  ;;  %s847_s15 = int_to_ptr.hbm [resolvable:$true] %s846_s15 }
   0x8   :  { %920 = vset.pattern.permute.xlu0 %v978_v0  ;;  %155 = vperm.xlu2 %922, %v69_v1   ;;  %v38_v6 = vld [vmem:[%s1550_s0 + $0x8] sm:$0xff]  ;;  %v41_v7 = vld [vmem:[%s1550_s0 + $0x20] sm:$0xff]  ;;  %v72_v8 = vld [vmem:[%s1551_s1 + $0x18] sm:$0xff] }
   0x9   :  { %121 = vperm.xlu1 %921, %v39_v2   ;;  %111 = vperm.xlu0 %920, %v37_v3   ;;  %v71_v9 = vld [vmem:[%s1551_s1 + $0x10] sm:$0xff]  ;;  %v44_v10 = vld [vmem:[%s1550_s0 + $0x38] sm:$0xff]  ;;  %v42_v12 = vld [vmem:[%s1550_s0 + $0x28] sm:$0xff] }
   0xa   :  { %v43_v11 = vld [vmem:[%s1550_s0 + $0x30] sm:$0xff]  ;;  %v74_v14 = vld [vmem:[%s1551_s1 + $0x28] sm:$0xff]  ;;  %v73_v15 = vld [vmem:[%s1551_s1 + $0x20] sm:$0xff] }
   0xb   :  { %v75_v13 = vld [vmem:[%s1551_s1 + $0x30] sm:$0xff]  ;;  %v46_v16 = vld [vmem:[%s1550_s0 + $0x48] sm:$0xff]  ;;  %v45_v17 = vld [vmem:[%s1550_s0 + $0x40] sm:$0xff] }
   0xc   :  { %v76_v18 = vld [vmem:[%s1551_s1 + $0x38] sm:$0xff]  ;;  %v77_v19 = vld [vmem:[%s1551_s1 + $0x40] sm:$0xff]  ;;  %v47_v21 = vld [vmem:[%s1550_s0 + $0x50] sm:$0xff] }
   0xd   :  { %v48_v20 = vld [vmem:[%s1550_s0 + $0x58] sm:$0xff]  ;;  %v79_v23 = vld [vmem:[%s1551_s1 + $0x50] sm:$0xff]  ;;  %v78_v24 = vld [vmem:[%s1551_s1 + $0x48] sm:$0xff] }
   0xe   :  { %v80_v22 = vld [vmem:[%s1551_s1 + $0x58] sm:$0xff]  ;;  %v51_v25 = vld [vmem:[%s1550_s0 + $0x70] sm:$0xff]  ;;  %v50_v26 = vld [vmem:[%s1550_s0 + $0x68] sm:$0xff] }
   0xf   :  { %v49_v27 = vld [vmem:[%s1550_s0 + $0x60] sm:$0xff]  ;;  %v82_v28 = vld [vmem:[%s1551_s1 + $0x68] sm:$0xff]  ;;  %v52_v30 = vld [vmem:[%s1550_s0 + $0x78] sm:$0xff] }
  0x10   :  { %160 = vperm.xlu2 %922, %v70_v4   ;;  %v81_v29 = vld [vmem:[%s1551_s1 + $0x60] sm:$0xff]  ;;  %v84_v32 = vld [vmem:[%s1551_s1 + $0x78] sm:$0xff]  ;;  %v83_v33 = vld [vmem:[%s1551_s1 + $0x70] sm:$0xff] }
  0x11   :  { %126 = vperm.xlu1 %921, %v40_v5   ;;  %116 = vperm.xlu0 %920, %v38_v6   ;;  %v53_v31 = vld [vmem:[%s1550_s0 + $0x80] sm:$0xff]  ;;  %v56_v34 = vld [vmem:[%s1550_s0 + $0x98] sm:$0xff]  ;;  %v55_v35 = vld [vmem:[%s1550_s0 + $0x90] sm:$0xff] }
  0x12   :  { %v54_v36 = vld [vmem:[%s1550_s0 + $0x88] sm:$0xff]  ;;  %v87_v38 = vld [vmem:[%s1551_s1 + $0x90] sm:$0xff]  ;;  %v85_v40 = vld [vmem:[%s1551_s1 + $0x80] sm:$0xff] }
  0x13   :  { %v86_v39 = vld [vmem:[%s1551_s1 + $0x88] sm:$0xff]  ;;  %v57_v43 = vld [vmem:[%s1550_s0 + $0xa0] sm:$0xff]  ;;  %v88_v44 = vld [vmem:[%s1551_s1 + $0x98] sm:$0xff] }
  0x14   :  { %v58_v42 = vld [vmem:[%s1550_s0 + $0xa8] sm:$0xff]  ;;  %v89_v46 = vld [vmem:[%s1551_s1 + $0xa0] sm:$0xff]  ;;  %v60_v47 = vld [vmem:[%s1550_s0 + $0xb8] sm:$0xff] }
  0x15   :  { %v59_v48 = vld [vmem:[%s1550_s0 + $0xb0] sm:$0xff]  ;;  %v145_v49 = vld [vmem:[#allocation2] sm:$0xff]  ;;  %v146_v50 = vld [vmem:[#allocation2 + $0x8] sm:$0xff] }
  0x16   :  { %v859_v51 = vld [vmem:[%s1552_s2 + $0x40] sm:$0xff]  ;;  %v860_v52 = vld [vmem:[%s1552_s2 + $0x48] sm:$0xff]  ;;  %v92_v0 = vld [vmem:[%s1551_s1 + $0xb8] sm:$0xff] }
  0x17   :  { %v101_v53 = vld [vmem:[%s1552_s2] sm:$0xff]  ;;  %v102_v54 = vld [vmem:[%s1552_s2 + $0x8] sm:$0xff]  ;;  %v91_v1 = vld [vmem:[%s1551_s1 + $0xb0] sm:$0xff] }
  0x18   :  { %200 = vperm.xlu2 %922, %v41_v7   ;;  %v90_v4 = vld [vmem:[%s1551_s1 + $0xa8] sm:$0xff]  ;;  %v147_v5 = vld [vmem:[#allocation2 + $0x10] sm:$0xff]  ;;  %v148_v6 = vld [vmem:[#allocation2 + $0x18] sm:$0xff] }
  0x19   :  { %170 = vperm.xlu1 %921, %v72_v8   ;;  %165 = vperm.xlu0 %920, %v71_v9   ;;  %v103_v9 = vld [vmem:[%s1552_s2 + $0x10] sm:$0xff] }
  0x20   :  { %215 = vperm.xlu2 %922, %v44_v10   ;;  %v104_v10 = vld [vmem:[%s1552_s2 + $0x18] sm:$0xff] }
  0x21   :  { %210 = vperm.xlu1 %921, %v43_v11   ;;  %205 = vperm.xlu0 %920, %v42_v12  }
  0x28   :  { %255 = vperm.xlu2 %922, %v75_v13  }
  0x29   :  { %250 = vperm.xlu1 %921, %v74_v14   ;;  %245 = vperm.xlu0 %920, %v73_v15  }
  0x30   :  { %295 = vperm.xlu2 %922, %v46_v16  }
  0x31   :  { %290 = vperm.xlu1 %921, %v45_v17   ;;  %260 = vperm.xlu0 %920, %v76_v18   ;;  %v63_v18 = vld [vmem:[%s1550_s0 + $0xd0] sm:$0xff] }
  0x38   :  { %335 = vperm.xlu2 %922, %v77_v19   ;;  %v62_v19 = vld [vmem:[%s1550_s0 + $0xc8] sm:$0xff] }
  0x39   :  { %305 = vperm.xlu1 %921, %v48_v20   ;;  %300 = vperm.xlu0 %920, %v47_v21  }
  0x40   :  { %350 = vperm.xlu2 %922, %v80_v22   ;;  %v61_v22 = vld [vmem:[%s1550_s0 + $0xc0] sm:$0xff] }
  0x41   :  { %345 = vperm.xlu1 %921, %v79_v23   ;;  %340 = vperm.xlu0 %920, %v78_v24   ;;  %v105_v23 = vld [vmem:[%s1552_s2 + $0x20] sm:$0xff]  ;;  %v107_v24 = vld [vmem:[%s1552_s2 + $0x30] sm:$0xff] }
  0x48   :  { %390 = vperm.xlu2 %922, %v51_v25   ;;  %v108_v25 = vld [vmem:[%s1552_s2 + $0x38] sm:$0xff] }
  0x49   :  { %385 = vperm.xlu1 %921, %v50_v26   ;;  %380 = vperm.xlu0 %920, %v49_v27   ;;  %v151_v26 = vld [vmem:[#allocation2 + $0x30] sm:$0xff]  ;;  %v152_v27 = vld [vmem:[#allocation2 + $0x38] sm:$0xff] }
  0x50   :  { %430 = vperm.xlu2 %922, %v82_v28   ;;  %v106_v28 = vld [vmem:[%s1552_s2 + $0x28] sm:$0xff] }
  0x51   :  { %425 = vperm.xlu1 %921, %v81_v29   ;;  %395 = vperm.xlu0 %920, %v52_v30   ;;  %v149_v29 = vld [vmem:[#allocation2 + $0x20] sm:$0xff]  ;;  %v150_v30 = vld [vmem:[#allocation2 + $0x28] sm:$0xff] }
  0x58   :  { %470 = vperm.xlu2 %922, %v53_v31   ;;  %v865_v31 = vld [vmem:[%s1552_s2 + $0x70] sm:$0xff] }
  0x59   :  { %440 = vperm.xlu1 %921, %v84_v32   ;;  %435 = vperm.xlu0 %920, %v83_v33   ;;  %v866_v32 = vld [vmem:[%s1552_s2 + $0x78] sm:$0xff] }
  0x60   :  { %485 = vperm.xlu2 %922, %v56_v34  }
  0x61   :  { %480 = vperm.xlu1 %921, %v55_v35   ;;  %475 = vperm.xlu0 %920, %v54_v36  }
  0x62   :  { %v156_v37 = vpop.permute.xlu2 %155 }
  0x63   :  { %v173_v55 = vmul.f32 %v156_v37, %v145_v49  ;;  %v174_v56 = vmul.f32 %v156_v37, %v146_v50  ;;  %v93_v49 = vld [vmem:[%s1551_s1 + $0xc0] sm:$0xff] }
  0x68   :  { %525 = vperm.xlu2 %922, %v87_v38  }
  0x69   :  { %520 = vperm.xlu1 %921, %v86_v39   ;;  %515 = vperm.xlu0 %920, %v85_v40  }
  0x6a   :  { %v161_v41 = vpop.permute.xlu2 %160 }
  0x6b   :  { %v175_v11 = vmul.f32 %v161_v41, %v147_v5  ;;  %v176_v12 = vmul.f32 %v161_v41, %v148_v6 }
  0x70   :  { %565 = vperm.xlu2 %922, %v58_v42  }
  0x71   :  { %560 = vperm.xlu1 %921, %v57_v43   ;;  %530 = vperm.xlu0 %920, %v88_v44  }
  0x72   :  { %v201_v45 = vpop.permute.xlu2 %200 }
  0x73   :  { %v218_v60 = vmul.f32 %v859_v51, %v201_v45  ;;  %v219_v61 = vmul.f32 %v860_v52, %v201_v45  ;;  %v64_v52 = vld [vmem:[%s1550_s0 + $0xd8] sm:$0xff] }
  0x78   :  { %605 = vperm.xlu2 %922, %v89_v46  }
  0x79   :  { %575 = vperm.xlu1 %921, %v60_v47   ;;  %570 = vperm.xlu0 %920, %v59_v48   ;;  %v94_v48 = vld [vmem:[%s1551_s1 + $0xc8] sm:$0xff] }
  0x7a   :  { %v216_v57 = vpop.permute.xlu2 %215 }
  0x7b   :  { %v122_v58 = vpop.permute.xlu1 %121  ;;  %v112_v59 = vpop.permute.xlu0 %111  ;;  %v224_v44 = vmul.f32 %v865_v31, %v216_v57  ;;  %v225_v45 = vmul.f32 %v866_v32, %v216_v57  ;;  %v861_v57 = vld [vmem:[%s1552_s2 + $0x50] sm:$0xff] }
  0x7c   :  { %v129_v62 = vmul.f32 %v112_v59, %v101_v53  ;;  %v130_v63 = vmul.f32 %v112_v59, %v102_v54  ;;  %v133_v40 = vmul.f32 %v122_v58, %v105_v23  ;;  %v134_v41 = vmul.f32 %v122_v58, %v106_v28  ;;  %v862_v58 = vld [vmem:[%s1552_s2 + $0x58] sm:$0xff]  ;;  %v239_v59 = vld [vmem:[#allocation2 + $0x60] sm:$0xff] }
  0x7e   :  { %v181_v2 = vadd.f32 %v173_v55, %v129_v62  ;;  %v182_v3 = vadd.f32 %v174_v56, %v130_v63  ;;  %v863_v55 = vld [vmem:[%s1552_s2 + $0x60] sm:$0xff]  ;;  %v864_v56 = vld [vmem:[%s1552_s2 + $0x68] sm:$0xff] }
  0x80   :  { %620 = vperm.xlu2 %922, %v92_v0   ;;  %v1172_v7 = vadd.f32 %v218_v60, %v181_v2  ;;  %v1174_v8 = vadd.f32 %v219_v61, %v182_v3  ;;  %v240_v60 = vld [vmem:[#allocation2 + $0x68] sm:$0xff] }
  0x81   :  { %615 = vperm.xlu1 %921, %v91_v1   ;;  %610 = vperm.xlu0 %920, %v90_v4  }
  0x82   :  { %v256_v13 = vpop.permute.xlu2 %255 }
  0x83   :  { %v127_v14 = vpop.permute.xlu1 %126  ;;  %v117_v15 = vpop.permute.xlu0 %116  ;;  %v267_v4 = vmul.f32 %v256_v13, %v239_v59  ;;  %v268_v5 = vmul.f32 %v256_v13, %v240_v60  ;;  %v237_v13 = vld [vmem:[#allocation2 + $0x50] sm:$0xff]  ;;  %v98_v59 = vld [vmem:[%s1551_s1 + $0xe8] sm:$0xff] }
  0x84   :  { %v131_v16 = vmul.f32 %v117_v15, %v103_v9  ;;  %v132_v17 = vmul.f32 %v117_v15, %v104_v10  ;;  %v135_v35 = vmul.f32 %v127_v14, %v107_v24  ;;  %v136_v36 = vmul.f32 %v127_v14, %v108_v25  ;;  %v65_v10 = vld [vmem:[%s1550_s0 + $0xe0] sm:$0xff]  ;;  %v95_v15 = vld [vmem:[%s1551_s1 + $0xd0] sm:$0xff] }
  0x86   :  { %v183_v20 = vadd.f32 %v175_v11, %v131_v16  ;;  %v184_v21 = vadd.f32 %v176_v12, %v132_v17  ;;  %v96_v11 = vld [vmem:[%s1551_s1 + $0xd8] sm:$0xff] }
  0x88   :  { %660 = vperm.xlu2 %922, %v63_v18   ;;  %v238_v18 = vld [vmem:[#allocation2 + $0x58] sm:$0xff] }
  0x89   :  { %655 = vperm.xlu1 %921, %v62_v19   ;;  %650 = vperm.xlu0 %920, %v61_v22   ;;  %v235_v19 = vld [vmem:[#allocation2 + $0x40] sm:$0xff]  ;;  %v236_v22 = vld [vmem:[#allocation2 + $0x48] sm:$0xff] }
  0x8a   :  { %v1209_v33 = vpop.permute.xlu2 %295 }
  0x8b   :  { %v171_v34 = vpop.permute.xlu1 %170  ;;  %v166_v39 = vpop.permute.xlu0 %165 }
  0x8c   :  { %v179_v37 = vmul.f32 %v171_v34, %v151_v26  ;;  %v180_v38 = vmul.f32 %v171_v34, %v152_v27  ;;  %v177_v42 = vmul.f32 %v166_v39, %v149_v29  ;;  %v178_v43 = vmul.f32 %v166_v39, %v150_v30  ;;  %v66_v39 = vld [vmem:[%s1550_s0 + $0xe8] sm:$0xff] }
  0x8e   :  { %v187_v46 = vadd.f32 %v179_v37, %v135_v35  ;;  %v188_v47 = vadd.f32 %v180_v38, %v136_v36  ;;  %v185_v50 = vadd.f32 %v177_v42, %v133_v40  ;;  %v186_v51 = vadd.f32 %v178_v43, %v134_v41  ;;  %v68_v35 = vld [vmem:[%s1550_s0 + $0xf8] sm:$0xff]  ;;  %v67_v36 = vld [vmem:[%s1550_s0 + $0xf0] sm:$0xff]  ;;  %v867_v41 = vld [vmem:[%s1552_s2 + $0x80] sm:$0xff] }
  0x8f   :  { %v242_v42 = vld [vmem:[#allocation2 + $0x78] sm:$0xff]  ;;  %v325_v43 = vld [vmem:[#allocation2 + $0x80] sm:$0xff] }
  0x90   :  { %v1220_v53 = vadd.f32 %v224_v44, %v187_v46  ;;  %v1222_v54 = vadd.f32 %v225_v45, %v188_v47  ;;  %700 = vperm.xlu2 %922, %v94_v48   ;;  %v326_v44 = vld [vmem:[#allocation2 + $0x88] sm:$0xff] }
  0x91   :  { %695 = vperm.xlu1 %921, %v93_v49   ;;  %665 = vperm.xlu0 %920, %v64_v52  }
  0x92   :  { %v336_v61 = vpop.permute.xlu2 %335 }
  0x93   :  { %v211_v62 = vpop.permute.xlu1 %210  ;;  %v206_v1 = vpop.permute.xlu0 %205  ;;  %v353_v52 = vmul.f32 %v336_v61, %v325_v43 }
  0x94   :  { %v222_v63 = vmul.f32 %v863_v55, %v211_v62  ;;  %v223_v0 = vmul.f32 %v864_v56, %v211_v62  ;;  %v220_v2 = vmul.f32 %v861_v57, %v206_v1  ;;  %v221_v3 = vmul.f32 %v862_v58, %v206_v1  ;;  %v99_v58 = vld [vmem:[%s1551_s1 + $0xf0] sm:$0xff] }
  0x95   :  { %v354_v55 = vmul.f32 %v336_v61, %v326_v44  ;;  %v873_v1 = vld [vmem:[%s1552_s2 + $0xb0] sm:$0xff] }
  0x96   :  { %v230_v6 = vadd.f32 %v222_v63, %v185_v50  ;;  %v231_v9 = vadd.f32 %v223_v0, %v186_v51  ;;  %v228_v12 = vadd.f32 %v220_v2, %v183_v20  ;;  %v229_v14 = vadd.f32 %v221_v3, %v184_v21  ;;  %v869_v20 = vld [vmem:[%s1552_s2 + $0x90] sm:$0xff]  ;;  %v870_v21 = vld [vmem:[%s1552_s2 + $0x98] sm:$0xff]  ;;  %v97_v63 = vld [vmem:[%s1551_s1 + $0xe0] sm:$0xff] }
  0x97   :  { %v310_v30 = vmul.f32 %v869_v20, %v1209_v33  ;;  %v311_v31 = vmul.f32 %v870_v21, %v1209_v33  ;;  %v872_v2 = vld [vmem:[%s1552_s2 + $0xa8] sm:$0xff]  ;;  %v331_v3 = vld [vmem:[#allocation2 + $0xb0] sm:$0xff]  ;;  %v100_v21 = vld [vmem:[%s1551_s1 + $0xf8] sm:$0xff] }
  0x98   :  { %v1245_v16 = vadd.f32 %v267_v4, %v230_v6  ;;  %v1247_v17 = vadd.f32 %v268_v5, %v231_v9  ;;  %740 = vperm.xlu2 %922, %v65_v10   ;;  %v332_v4 = vld [vmem:[#allocation2 + $0xb8] sm:$0xff]  ;;  %v877_v44 = vld [vmem:[%s1552_s2 + $0xd0] sm:$0xff] }
  0x99   :  { %710 = vperm.xlu1 %921, %v96_v11   ;;  %705 = vperm.xlu0 %920, %v95_v15  }
  0x9a   :  { %v351_v23 = vpop.permute.xlu2 %350 }
  0x9b   :  { %v251_v24 = vpop.permute.xlu1 %250  ;;  %v246_v27 = vpop.permute.xlu0 %245  ;;  %v359_v15 = vmul.f32 %v351_v23, %v331_v3  ;;  %v881_v3 = vld [vmem:[%s1552_s2 + $0xf0] sm:$0xff] }
  0x9c   :  { %v265_v25 = vmul.f32 %v251_v24, %v237_v13  ;;  %v266_v26 = vmul.f32 %v251_v24, %v238_v18  ;;  %v263_v28 = vmul.f32 %v246_v27, %v235_v19  ;;  %v264_v29 = vmul.f32 %v246_v27, %v236_v22  ;;  %v330_v27 = vld [vmem:[#allocation2 + $0xa8] sm:$0xff] }
  0x9d   :  { %v360_v13 = vmul.f32 %v351_v23, %v332_v4  ;;  %v879_v23 = vld [vmem:[%s1552_s2 + $0xe0] sm:$0xff]  ;;  %v882_v4 = vld [vmem:[%s1552_s2 + $0xf8] sm:$0xff] }
  0x9e   :  { %v273_v32 = vadd.f32 %v265_v25, %v228_v12  ;;  %v274_v34 = vadd.f32 %v266_v26, %v229_v14  ;;  %v271_v37 = vadd.f32 %v263_v28, %v1172_v7  ;;  %v272_v38 = vadd.f32 %v264_v29, %v1174_v8  ;;  %v868_v7 = vld [vmem:[%s1552_s2 + $0x88] sm:$0xff]  ;;  %v241_v8 = vld [vmem:[#allocation2 + $0x70] sm:$0xff]  ;;  %v329_v26 = vld [vmem:[#allocation2 + $0xa0] sm:$0xff] }
  0x9f   :  { %v327_v28 = vld [vmem:[#allocation2 + $0x90] sm:$0xff]  ;;  %v328_v29 = vld [vmem:[#allocation2 + $0x98] sm:$0xff] }
  0xa0   :  { %v1268_v40 = vadd.f32 %v310_v30, %v273_v32  ;;  %v1270_v33 = vadd.f32 %v311_v31, %v274_v34  ;;  %755 = vperm.xlu2 %922, %v68_v35  }
  0xa1   :  { %750 = vperm.xlu1 %921, %v67_v36   ;;  %745 = vperm.xlu0 %920, %v66_v39  }
  0xa2   :  { %v391_v45 = vpop.permute.xlu2 %390 }
  0xa3   :  { %v291_v46 = vpop.permute.xlu1 %290  ;;  %v261_v49 = vpop.permute.xlu0 %260 }
  0xa4   :  { %v308_v47 = vmul.f32 %v867_v41, %v291_v46  ;;  %v309_v48 = vmul.f32 %v868_v7, %v291_v46  ;;  %v269_v50 = vmul.f32 %v261_v49, %v241_v8  ;;  %v270_v51 = vmul.f32 %v261_v49, %v242_v42  ;;  %v878_v46 = vld [vmem:[%s1552_s2 + $0xd8] sm:$0xff] }
  0xa6   :  { %v316_v56 = vadd.f32 %v308_v47, %v271_v37  ;;  %v317_v57 = vadd.f32 %v309_v48, %v272_v38  ;;  %v277_v60 = vadd.f32 %v269_v50, %v1220_v53  ;;  %v278_v62 = vadd.f32 %v270_v51, %v1222_v54  ;;  %v874_v53 = vld [vmem:[%s1552_s2 + $0xb8] sm:$0xff]  ;;  %v871_v54 = vld [vmem:[%s1552_s2 + $0xa0] sm:$0xff] }
  0xa7   :  { %v402_v37 = vmul.f32 %v879_v23, %v391_v45  ;;  %v418_v47 = vld [vmem:[#allocation2 + $0xd8] sm:$0xff] }
  0xa8   :  { %v1289_v0 = vadd.f32 %v353_v52, %v316_v56  ;;  %v1291_v61 = vadd.f32 %v354_v55, %v317_v57  ;;  %795 = vperm.xlu2 %922, %v99_v58   ;;  %v890_v23 = vld [vmem:[%s1552_s2 + $0x138] sm:$0xff] }
  0xa9   :  { %790 = vperm.xlu1 %921, %v98_v59   ;;  %785 = vperm.xlu0 %920, %v97_v63  }
  0xaa   :  { %v431_v5 = vpop.permute.xlu2 %430 }
  0xab   :  { %v306_v6 = vpop.permute.xlu1 %305  ;;  %v301_v11 = vpop.permute.xlu0 %300  ;;  %v446_v58 = vmul.f32 %v431_v5, %v418_v47 }
  0xac   :  { %v314_v9 = vmul.f32 %v873_v1, %v306_v6  ;;  %v315_v10 = vmul.f32 %v874_v53, %v306_v6  ;;  %v312_v12 = vmul.f32 %v871_v54, %v301_v11  ;;  %v313_v14 = vmul.f32 %v872_v2, %v301_v11  ;;  %v415_v54 = vld [vmem:[#allocation2 + $0xc0] sm:$0xff]  ;;  %v416_v2 = vld [vmem:[#allocation2 + $0xc8] sm:$0xff] }
  0xae   :  { %v322_v18 = vadd.f32 %v314_v9, %v277_v60  ;;  %v323_v19 = vadd.f32 %v315_v10, %v278_v62  ;;  %v320_v22 = vadd.f32 %v312_v12, %v1245_v16  ;;  %v321_v20 = vadd.f32 %v313_v14, %v1247_v17  ;;  %v880_v16 = vld [vmem:[%s1552_s2 + $0xe8] sm:$0xff] }
  0xaf   :  { %v403_v38 = vmul.f32 %v880_v16, %v391_v45  ;;  %v875_v45 = vld [vmem:[%s1552_s2 + $0xc0] sm:$0xff] }
  0xb0   :  { %v367_v24 = vadd.f32 %v359_v15, %v322_v18  ;;  %v368_v25 = vadd.f32 %v360_v13, %v323_v19 }
  0xb1   :  { %800 = vperm.xlu0 %920, %v100_v21  }
  0xb2   :  { %v471_v17 = vpop.permute.xlu2 %470 }
  0xb3   :  { %v346_v30 = vpop.permute.xlu1 %345  ;;  %v341_v34 = vpop.permute.xlu0 %340 }
  0xb4   :  { %v357_v31 = vmul.f32 %v346_v30, %v329_v26  ;;  %v358_v32 = vmul.f32 %v346_v30, %v330_v27  ;;  %v355_v35 = vmul.f32 %v341_v34, %v327_v28  ;;  %v356_v36 = vmul.f32 %v341_v34, %v328_v29  ;;  %v421_v27 = vld [vmem:[#allocation2 + $0xf0] sm:$0xff]  ;;  %v422_v28 = vld [vmem:[#allocation2 + $0xf8] sm:$0xff] }
  0xb5   :  { %v889_v29 = vld [vmem:[%s1552_s2 + $0x130] sm:$0xff] }
  0xb6   :  { %v365_v39 = vadd.f32 %v357_v31, %v320_v22  ;;  %v366_v41 = vadd.f32 %v358_v32, %v321_v20  ;;  %v363_v7 = vadd.f32 %v355_v35, %v1268_v40  ;;  %v364_v8 = vadd.f32 %v356_v36, %v1270_v33  ;;  %v876_v40 = vld [vmem:[%s1552_s2 + $0xc8] sm:$0xff]  ;;  %v417_v33 = vld [vmem:[#allocation2 + $0xd0] sm:$0xff] }
  0xb7   :  { %v445_v57 = vmul.f32 %v431_v5, %v417_v33 }
  0xb8   :  { %v1318_v42 = vadd.f32 %v402_v37, %v365_v39  ;;  %v1320_v43 = vadd.f32 %v403_v38, %v366_v41 }
  0xba   :  { %v486_v48 = vpop.permute.xlu2 %485 }
  0xbb   :  { %v386_v49 = vpop.permute.xlu1 %385  ;;  %v381_v52 = vpop.permute.xlu0 %380  ;;  %v495_v32 = vmul.f32 %v890_v23, %v486_v48 }
  0xbc   :  { %v400_v50 = vmul.f32 %v877_v44, %v386_v49  ;;  %v401_v51 = vmul.f32 %v878_v46, %v386_v49  ;;  %v398_v55 = vmul.f32 %v875_v45, %v381_v52  ;;  %v399_v56 = vmul.f32 %v876_v40, %v381_v52  ;;  %v419_v52 = vld [vmem:[#allocation2 + $0xe0] sm:$0xff] }
  0xbe   :  { %v408_v59 = vadd.f32 %v400_v50, %v363_v7  ;;  %v409_v60 = vadd.f32 %v401_v51, %v364_v8  ;;  %v406_v62 = vadd.f32 %v398_v55, %v1289_v0  ;;  %v407_v63 = vadd.f32 %v399_v56, %v1291_v61  ;;  %v883_v0 = vld [vmem:[%s1552_s2 + $0x100] sm:$0xff]  ;;  %v884_v61 = vld [vmem:[%s1552_s2 + $0x108] sm:$0xff] }
  0xbf   :  { %v488_v15 = vmul.f32 %v883_v0, %v471_v17  ;;  %v489_v13 = vmul.f32 %v884_v61, %v471_v17  ;;  %v420_v56 = vld [vmem:[#allocation2 + $0xe8] sm:$0xff]  ;;  %v507_v61 = vld [vmem:[#allocation2 + $0x110] sm:$0xff] }
  0xc0   :  { %v1336_v1 = vadd.f32 %v445_v57, %v408_v59  ;;  %v1338_v53 = vadd.f32 %v446_v58, %v409_v60  ;;  %v887_v57 = vld [vmem:[%s1552_s2 + $0x120] sm:$0xff]  ;;  %v888_v60 = vld [vmem:[%s1552_s2 + $0x128] sm:$0xff] }
  0xc2   :  { %v1352_v5 = vpop.permute.xlu2 %525 }
  0xc3   :  { %v426_v6 = vpop.permute.xlu1 %425  ;;  %v396_v11 = vpop.permute.xlu0 %395 }
  0xc4   :  { %v443_v9 = vmul.f32 %v426_v6, %v415_v54  ;;  %v444_v10 = vmul.f32 %v426_v6, %v416_v2  ;;  %v404_v12 = vmul.f32 %v881_v3, %v396_v11  ;;  %v405_v14 = vmul.f32 %v882_v4, %v396_v11  ;;  %v886_v54 = vld [vmem:[%s1552_s2 + $0x118] sm:$0xff]  ;;  %v509_v2 = vld [vmem:[#allocation2 + $0x120] sm:$0xff]  ;;  %v510_v4 = vld [vmem:[#allocation2 + $0x128] sm:$0xff] }
  0xc5   :  { %v508_v6 = vld [vmem:[#allocation2 + $0x118] sm:$0xff] }
  0xc6   :  { %v451_v18 = vadd.f32 %v443_v9, %v406_v62  ;;  %v452_v19 = vadd.f32 %v444_v10, %v407_v63  ;;  %v412_v22 = vadd.f32 %v404_v12, %v367_v24  ;;  %v413_v20 = vadd.f32 %v405_v14, %v368_v25  ;;  %v885_v63 = vld [vmem:[%s1552_s2 + $0x110] sm:$0xff]  ;;  %v894_v10 = vld [vmem:[%s1552_s2 + $0x158] sm:$0xff] }
  0xc7   :  { %v494_v25 = vmul.f32 %v889_v29, %v486_v48  ;;  %v893_v9 = vld [vmem:[%s1552_s2 + $0x150] sm:$0xff]  ;;  %v538_v29 = vmul.f32 %v1352_v5, %v510_v4 }
  0xc8   :  { %v1354_v21 = vadd.f32 %v488_v15, %v451_v18  ;;  %v1356_v26 = vadd.f32 %v489_v13, %v452_v19  ;;  %v505_v15 = vld [vmem:[#allocation2 + $0x100] sm:$0xff]  ;;  %v537_v18 = vmul.f32 %v1352_v5, %v509_v2  ;;  %v892_v5 = vld [vmem:[%s1552_s2 + $0x148] sm:$0xff] }
  0xca   :  { %v566_v17 = vpop.permute.xlu2 %565 }
  0xcb   :  { %v441_v16 = vpop.permute.xlu1 %440  ;;  %v436_v24 = vpop.permute.xlu0 %435 }
  0xcc   :  { %v449_v30 = vmul.f32 %v441_v16, %v421_v27  ;;  %v450_v31 = vmul.f32 %v441_v16, %v422_v28  ;;  %v447_v59 = vmul.f32 %v436_v24, %v419_v52  ;;  %v448_v62 = vmul.f32 %v436_v24, %v420_v56  ;;  %v506_v27 = vld [vmem:[#allocation2 + $0x108] sm:$0xff]  ;;  %v599_v52 = vld [vmem:[#allocation2 + $0x160] sm:$0xff] }
  0xcd   :  { %v580_v24 = vmul.f32 %v893_v9, %v566_v17  ;;  %v600_v56 = vld [vmem:[#allocation2 + $0x168] sm:$0xff] }
  0xce   :  { %v457_v34 = vadd.f32 %v449_v30, %v412_v22  ;;  %v458_v35 = vadd.f32 %v450_v31, %v413_v20  ;;  %v455_v11 = vadd.f32 %v447_v59, %v1318_v42  ;;  %v456_v19 = vadd.f32 %v448_v62, %v1320_v43  ;;  %v595_v22 = vld [vmem:[#allocation2 + $0x140] sm:$0xff]  ;;  %v596_v20 = vld [vmem:[#allocation2 + $0x148] sm:$0xff]  ;;  %v601_v59 = vld [vmem:[#allocation2 + $0x170] sm:$0xff] }
  0xcf   :  { %v891_v42 = vld [vmem:[%s1552_s2 + $0x140] sm:$0xff]  ;;  %v896_v43 = vld [vmem:[%s1552_s2 + $0x168] sm:$0xff] }
  0xd0   :  { %v1364_v36 = vadd.f32 %v494_v25, %v457_v34  ;;  %v1366_v37 = vadd.f32 %v495_v32, %v458_v35  ;;  %v895_v31 = vld [vmem:[%s1552_s2 + $0x160] sm:$0xff]  ;;  %v581_v25 = vmul.f32 %v894_v10, %v566_v17  ;;  %v511_v17 = vld [vmem:[#allocation2 + $0x130] sm:$0xff] }
  0xd2   :  { %v606_v41 = vpop.permute.xlu2 %605 }
  0xd3   :  { %v481_v38 = vpop.permute.xlu1 %480  ;;  %v476_v39 = vpop.permute.xlu0 %475  ;;  %v623_v35 = vmul.f32 %v606_v41, %v595_v22  ;;  %v598_v22 = vld [vmem:[#allocation2 + $0x158] sm:$0xff] }
  0xd4   :  { %v492_v3 = vmul.f32 %v887_v57, %v481_v38  ;;  %v493_v0 = vmul.f32 %v888_v60, %v481_v38  ;;  %v490_v12 = vmul.f32 %v885_v63, %v476_v39  ;;  %v491_v14 = vmul.f32 %v886_v54, %v476_v39  ;;  %v602_v60 = vld [vmem:[#allocation2 + $0x178] sm:$0xff] }
  0xd5   :  { %v624_v57 = vmul.f32 %v606_v41, %v596_v20  ;;  %v903_v41 = vld [vmem:[%s1552_s2 + $0x1a0] sm:$0xff] }
  0xd6   :  { %v500_v23 = vadd.f32 %v492_v3, %v455_v11  ;;  %v501_v32 = vadd.f32 %v493_v0, %v456_v19  ;;  %v498_v38 = vadd.f32 %v490_v12, %v1336_v1  ;;  %v499_v39 = vadd.f32 %v491_v14, %v1338_v53  ;;  %v512_v1 = vld [vmem:[#allocation2 + $0x138] sm:$0xff]  ;;  %v597_v19 = vld [vmem:[#allocation2 + $0x150] sm:$0xff] }
  0xd7   :  { %v898_v12 = vld [vmem:[%s1552_s2 + $0x178] sm:$0xff] }
  0xda   :  { %v1368_v44 = vpop.permute.xlu2 %620 }
  0xdb   :  { %v521_v7 = vpop.permute.xlu1 %520  ;;  %v516_v8 = vpop.permute.xlu0 %515  ;;  %v1444_v10 = vmul.f32 %v1368_v44, %v602_v60 }
  0xdc   :  { %v535_v16 = vmul.f32 %v521_v7, %v507_v61  ;;  %v536_v30 = vmul.f32 %v521_v7, %v508_v6  ;;  %v533_v34 = vmul.f32 %v516_v8, %v505_v15  ;;  %v534_v7 = vmul.f32 %v516_v8, %v506_v27 }
  0xdd   :  { %v545_v61 = vadd.f32 %v537_v18, %v500_v23  ;;  %v546_v8 = vadd.f32 %v538_v29, %v501_v32 }
  0xde   :  { %v543_v3 = vadd.f32 %v535_v16, %v498_v38  ;;  %v544_v4 = vadd.f32 %v536_v30, %v499_v39  ;;  %v541_v53 = vadd.f32 %v533_v34, %v1354_v21  ;;  %v897_v21 = vld [vmem:[%s1552_s2 + $0x170] sm:$0xff]  ;;  %v689_v30 = vld [vmem:[#allocation2 + $0x1a0] sm:$0xff] }
  0xe0   :  { %v588_v23 = vadd.f32 %v580_v24, %v543_v3  ;;  %v589_v16 = vadd.f32 %v581_v25, %v544_v4  ;;  %v899_v24 = vld [vmem:[%s1552_s2 + $0x180] sm:$0xff] }
  0xe1   :  { %v779_v3 = vld [vmem:[#allocation2 + $0x1e0] sm:$0xff] }
  0xe2   :  { %v1374_v40 = vpop.permute.xlu2 %660 }
  0xe3   :  { %v1370_v46 = vpop.permute.xlu1 %560  ;;  %v1372_v45 = vpop.permute.xlu0 %530  ;;  %v672_v27 = vmul.f32 %v903_v41, %v1374_v40  ;;  %v686_v41 = vld [vmem:[#allocation2 + $0x188] sm:$0xff] }
  0xe4   :  { %v578_v62 = vmul.f32 %v891_v42, %v1370_v46  ;;  %v579_v0 = vmul.f32 %v892_v5, %v1370_v46  ;;  %v542_v46 = vadd.f32 %v534_v7, %v1356_v26  ;;  %v539_v11 = vmul.f32 %v1372_v45, %v511_v17  ;;  %v690_v42 = vld [vmem:[#allocation2 + $0x1a8] sm:$0xff]  ;;  %v902_v5 = vld [vmem:[%s1552_s2 + $0x198] sm:$0xff] }
  0xe5   :  { %v540_v15 = vmul.f32 %v1372_v45, %v512_v1  ;;  %v901_v45 = vld [vmem:[%s1552_s2 + $0x190] sm:$0xff] }
  0xe6   :  { %v587_v29 = vadd.f32 %v579_v0, %v542_v46  ;;  %v547_v38 = vadd.f32 %v539_v11, %v1364_v36  ;;  %v688_v46 = vld [vmem:[#allocation2 + $0x198] sm:$0xff] }
  0xe7   :  { %v548_v7 = vadd.f32 %v540_v15, %v1366_v37  ;;  %v912_v37 = vld [vmem:[%s1552_s2 + $0x1e8] sm:$0xff] }
  0xea   :  { %v1380_v49 = vpop.permute.xlu2 %700 }
  0xeb   :  { %v1376_v33 = vpop.permute.xlu1 %575  ;;  %v571_v47 = vpop.permute.xlu0 %570 }
  0xec   :  { %v582_v63 = vmul.f32 %v895_v31, %v571_v47  ;;  %v583_v54 = vmul.f32 %v896_v43, %v571_v47  ;;  %v1441_v47 = vmul.f32 %v1368_v44, %v601_v59  ;;  %v586_v44 = vadd.f32 %v578_v62, %v541_v53  ;;  %v685_v59 = vld [vmem:[#allocation2 + $0x180] sm:$0xff] }
  0xed   :  { %v584_v31 = vmul.f32 %v897_v21, %v1376_v33  ;;  %v585_v43 = vmul.f32 %v898_v12, %v1376_v33 }
  0xee   :  { %v590_v26 = vadd.f32 %v582_v63, %v545_v61  ;;  %v591_v18 = vadd.f32 %v583_v54, %v546_v8  ;;  %v632_v63 = vadd.f32 %v624_v57, %v587_v29  ;;  %v780_v57 = vld [vmem:[#allocation2 + $0x1e8] sm:$0xff] }
  0xef   :  { %v593_v54 = vadd.f32 %v585_v43, %v548_v7  ;;  %v777_v7 = vld [vmem:[#allocation2 + $0x1d0] sm:$0xff] }
  0xf2   :  { %v1391_v58 = vpop.permute.xlu2 %740 }
  0xf3   :  { %v1378_v48 = vpop.permute.xlu1 %615  ;;  %v1382_v50 = vpop.permute.xlu0 %610 }
  0xf4   :  { %v627_v6 = vmul.f32 %v1378_v48, %v599_v52  ;;  %v628_v9 = vmul.f32 %v1378_v48, %v600_v56  ;;  %v904_v48 = vld [vmem:[%s1552_s2 + $0x1a8] sm:$0xff]  ;;  %v625_v33 = vmul.f32 %v1382_v50, %v597_v19  ;;  %v626_v39 = vmul.f32 %v1382_v50, %v598_v22  ;;  %v911_v50 = vld [vmem:[%s1552_s2 + $0x1e0] sm:$0xff]  ;;  %v910_v22 = vld [vmem:[%s1552_s2 + $0x1d8] sm:$0xff] }
  0xf5   :  { %v673_v25 = vmul.f32 %v904_v48, %v1374_v40  ;;  %v631_v52 = vadd.f32 %v623_v35, %v586_v44  ;;  %v900_v56 = vld [vmem:[%s1552_s2 + $0x188] sm:$0xff]  ;;  %v592_v35 = vadd.f32 %v584_v31, %v547_v38 }
  0xf6   :  { %v635_v32 = vadd.f32 %v627_v6, %v590_v26  ;;  %v636_v34 = vadd.f32 %v628_v9, %v591_v18  ;;  %v633_v61 = vadd.f32 %v625_v33, %v588_v23  ;;  %v634_v53 = vadd.f32 %v626_v39, %v589_v16  ;;  %v687_v9 = vld [vmem:[#allocation2 + $0x190] sm:$0xff]  ;;  %v908_v31 = vld [vmem:[%s1552_s2 + $0x1c8] sm:$0xff] }
  0xf7   :  { %v637_v33 = vadd.f32 %v1441_v47, %v592_v35  ;;  %v833_v39 = vld [vmem:[%s1554_s4 + $0x10] sm:$0xff] }
  0xf8   :  { %v680_v0 = vadd.f32 %v672_v27, %v635_v32  ;;  %v681_v1 = vadd.f32 %v673_v25, %v636_v34  ;;  %v905_v34 = vld [vmem:[%s1552_s2 + $0x1b0] sm:$0xff] }
  0xfa   :  { %v1431_v2 = vpop.permute.xlu2 %755 }
  0xfb   :  { %v1384_v51 = vpop.permute.xlu1 %655  ;;  %v1386_v55 = vpop.permute.xlu0 %650 }
  0xfc   :  { %v670_v17 = vmul.f32 %v901_v45, %v1384_v51  ;;  %v671_v40 = vmul.f32 %v902_v5, %v1384_v51  ;;  %v668_v36 = vmul.f32 %v899_v24, %v1386_v55  ;;  %v669_v51 = vmul.f32 %v900_v56, %v1386_v55  ;;  %v909_v55 = vld [vmem:[%s1552_s2 + $0x1d0] sm:$0xff] }
  0xfd   :  { %v691_v45 = vld [vmem:[#allocation2 + $0x1b0] sm:$0xff] }
  0xfe   :  { %v678_v15 = vadd.f32 %v670_v17, %v633_v61  ;;  %v679_v26 = vadd.f32 %v671_v40, %v634_v53  ;;  %v676_v18 = vadd.f32 %v668_v36, %v631_v52  ;;  %v677_v43 = vadd.f32 %v669_v51, %v632_v63  ;;  %v778_v52 = vld [vmem:[#allocation2 + $0x1d8] sm:$0xff]  ;;  %v775_v40 = vld [vmem:[#allocation2 + $0x1c0] sm:$0xff]  ;;  %v776_v63 = vld [vmem:[#allocation2 + $0x1c8] sm:$0xff] }
  0xff   :  { %v759_v36 = vmul.f32 %v908_v31, %v1391_v58 }
 0x102   :  { %v796_v4 = vpop.permute.xlu2 %795 }
 0x103   :  { %v1409_v13 = vpop.permute.xlu1 %695  ;;  %v1413_v28 = vpop.permute.xlu0 %665  ;;  %v807_v19 = vmul.f32 %v796_v4, %v779_v3  ;;  %v808_v27 = vmul.f32 %v796_v4, %v780_v57 }
 0x104   :  { %v713_v8 = vmul.f32 %v1409_v13, %v685_v59  ;;  %v714_v29 = vmul.f32 %v1409_v13, %v686_v41  ;;  %v906_v13 = vld [vmem:[%s1552_s2 + $0x1b8] sm:$0xff]  ;;  %v638_v59 = vadd.f32 %v1444_v10, %v593_v54  ;;  %v674_v47 = vmul.f32 %v905_v34, %v1413_v28 }
 0x106   :  { %v721_v32 = vadd.f32 %v713_v8, %v676_v18  ;;  %v722_v56 = vadd.f32 %v714_v29, %v677_v43 }
 0x108   :  { %v767_v41 = vadd.f32 %v759_v36, %v722_v56 }
 0x10b   :  { %v1454_v14 = vpop.permute.xlu1 %710  ;;  %v706_v20 = vpop.permute.xlu0 %705 }
 0x10c   :  { %v717_v60 = vmul.f32 %v706_v20, %v689_v30  ;;  %v718_v62 = vmul.f32 %v706_v20, %v690_v42  ;;  %v907_v20 = vld [vmem:[%s1552_s2 + $0x1c0] sm:$0xff]  ;;  %v715_v30 = vmul.f32 %v1380_v49, %v687_v9  ;;  %v716_v42 = vmul.f32 %v1380_v49, %v688_v46  ;;  %v913_v46 = vld [vmem:[%s1552_s2 + $0x1f0] sm:$0xff] }
 0x10d   :  { %v758_v49 = vmul.f32 %v907_v20, %v1391_v58 }
 0x10e   :  { %v725_v11 = vadd.f32 %v717_v60, %v680_v0  ;;  %v726_v21 = vadd.f32 %v718_v62, %v681_v1  ;;  %v692_v60 = vld [vmem:[#allocation2 + $0x1b8] sm:$0xff]  ;;  %v723_v62 = vadd.f32 %v715_v30, %v678_v15  ;;  %v724_v17 = vadd.f32 %v716_v42, %v679_v26 }
 0x10f   :  { %v766_v35 = vadd.f32 %v758_v49, %v721_v32  ;;  %v719_v1 = vmul.f32 %v1454_v14, %v691_v45  ;;  %v720_v61 = vmul.f32 %v1454_v14, %v692_v60  ;;  %v914_v14 = vld [vmem:[%s1552_s2 + $0x1f8] sm:$0xff]  ;;  %v764_v26 = vmul.f32 %v913_v46, %v1431_v2  ;;  %s979_s2 = smov [#allocation5]  }
 0x110   :  { %v782_v15 = vld [vmem:[#allocation2 + $0x1f8] sm:$0xff]  ;;  %v765_v18 = vmul.f32 %v914_v14, %v1431_v2  ;;  %s844_s13 = sshll.u32 %s979_s2, 4  ;;  %s845_s13 = int_to_ptr.vmem [resolvable:$true] %s844_s13 }
 0x111   :  { %v834_v2 = vld [vmem:[%s1554_s4 + $0x18] sm:$0xff] }
 0x113   :  { %v751_v6 = vpop.permute.xlu1 %750  ;;  %v746_v44 = vpop.permute.xlu0 %745 }
 0x114   :  { %v762_v12 = vmul.f32 %v911_v50, %v751_v6  ;;  %v763_v48 = vmul.f32 %v912_v37, %v751_v6  ;;  %v760_v25 = vmul.f32 %v909_v55, %v746_v44  ;;  %v761_v38 = vmul.f32 %v910_v22, %v746_v44  ;;  %v832_v6 = vld [vmem:[%s1554_s4 + $0x8] sm:$0xff]  ;;  %v781_v44 = vld [vmem:[#allocation2 + $0x1f0] sm:$0xff] }
 0x115   :  { %v675_v50 = vmul.f32 %v906_v13, %v1413_v28  ;;  %v682_v28 = vadd.f32 %v674_v47, %v637_v33 }
 0x116   :  { %v770_v23 = vadd.f32 %v762_v12, %v725_v11  ;;  %v771_v16 = vadd.f32 %v763_v48, %v726_v21  ;;  %v768_v3 = vadd.f32 %v760_v25, %v723_v62  ;;  %v769_v4 = vadd.f32 %v761_v38, %v724_v17  ;;  %v831_v48 = vld [vmem:[%s1554_s4] sm:$0xff] }
 0x117   :  { %v683_v8 = vadd.f32 %v675_v50, %v638_v59  ;;  %v727_v21 = vadd.f32 %v719_v1, %v682_v28 }
 0x118   :  { %v815_v5 = vadd.f32 %v807_v19, %v770_v23  ;;  %v816_v24 = vadd.f32 %v808_v27, %v771_v16 }
 0x119   :  { %v728_v12 = vadd.f32 %v720_v61, %v683_v8  ;;  %v772_v55 = vadd.f32 %v764_v26, %v727_v21 }
 0x11a   :  { %823 = vst [vmem:[#allocation5 + $0x20] sm:$0xff] %v815_v5 }
 0x11b   :  { %824 = vst [vmem:[#allocation5 + $0x28] sm:$0xff] %v816_v24  ;;  %v791_v37 = vpop.permute.xlu1 %790  ;;  %v786_v0 = vpop.permute.xlu0 %785  ;;  %v773_v22 = vadd.f32 %v765_v18, %v728_v12 }
 0x11c   :  { %838 = vst.msk [vmem:[#allocation5 + $0x20] sm:$0xff] %vm835_vm0, %v833_v39  ;;  %v805_v10 = vmul.f32 %v791_v37, %v777_v7  ;;  %v806_v54 = vmul.f32 %v791_v37, %v778_v52  ;;  %v803_v53 = vmul.f32 %v786_v0, %v775_v40  ;;  %v804_v58 = vmul.f32 %v786_v0, %v776_v63 }
 0x11e   :  { %v813_v51 = vadd.f32 %v805_v10, %v768_v3  ;;  %v814_v57 = vadd.f32 %v806_v54, %v769_v4  ;;  %v811_v9 = vadd.f32 %v803_v53, %v766_v35  ;;  %v812_v11 = vadd.f32 %v804_v58, %v767_v41 }
 0x120   :  { %821 = vst [vmem:[#allocation5 + $0x10] sm:$0xff] %v813_v51 }
 0x121   :  { %822 = vst [vmem:[#allocation5 + $0x18] sm:$0xff] %v814_v57 }
 0x122   :  { %837 = vst.msk [vmem:[#allocation5 + $0x10] sm:$0xff] %vm835_vm0, %v832_v6 }
 0x123   :  { %819 = vst [vmem:[#allocation5] sm:$0xff] %v811_v9  ;;  %v801_v19 = vpop.permute.xlu0 %800 }
 0x124   :  { %820 = vst [vmem:[#allocation5 + $0x8] sm:$0xff] %v812_v11  ;;  %v809_v20 = vmul.f32 %v801_v19, %v781_v44  ;;  %v810_v27 = vmul.f32 %v801_v19, %v782_v15 }
 0x125   :  { %836 = vst.msk [vmem:[#allocation5] sm:$0xff] %vm835_vm0, %v831_v48 }
 0x126   :  { %v817_v29 = vadd.f32 %v809_v20, %v772_v55  ;;  %v818_v23 = vadd.f32 %v810_v27, %v773_v22 }
 0x128   :  { %825 = vst [vmem:[#allocation5 + $0x30] sm:$0xff] %v817_v29 }
 0x129   :  { %826 = vst [vmem:[#allocation5 + $0x38] sm:$0xff] %v818_v23 }
 0x12a   :  { %839 = vst.msk [vmem:[#allocation5 + $0x30] sm:$0xff] %vm835_vm0, %v834_v2 }
 0x12b   :  { %852 = dma.vmem_to_hbm [thread:$0]  %s845_s13, 1024, %s847_s15, [#allocation4], %s976_s23, %s976_s23, %s977_s24  }
 0x12c   :  { %973 = dma.done.wait [#allocation4], 1024  }
 0x12d   :  { %974 = vsyncadd [#allocation4], 4294966272 }
 0x12e   :  { %857 = vsyncpa [#allocation3], 1 }
 0x12f   :  { %858 = vsyncpa [#allocation4], 1 }

// kernel: tpu_custom_call.1
= control target key start
LH: loop header
LB: loop body
LE: loop exit
PB: predicated region body
PF: predicated region fallthrough
CT: control target
= control target key end

     0   :  { %10 = vsyncpa [#allocation3], 0  ;;  %s1550_s0 = inlined_call_operand.vmem [shape: f32[1,8,32,1], index: 0, kind: input, shape index: {}]   ;;  %s1551_s1 = inlined_call_operand.vmem [shape: f32[1,8,32,1], index: 1, kind: input, shape index: {}]   ;;  %s1552_s2 = inlined_call_operand.vmem [shape: f32[8,32,256], index: 2, kind: input, shape index: {}]   ;;  %s1553_s3 = inlined_call_operand.hbm [shape: f32[8,32,256], index: 3, kind: input, shape index: {}]   ;;  %s1554_s4 = inlined_call_operand.vmem [shape: f32[32,1], index: 4, kind: input, shape index: {}]   ;;  %s1555_s5 = inlined_call_operand.hbm [shape: f32[32,256], index: 5, kind: output, shape index: {}]  }
   0x1   :  { %11 = vsyncpa [#allocation4], 0  ;;  %s22_s20 = sshll.u32 %s1553_s3, 4  ;;  %s975_s21 = smov [#allocation2]   ;;  %s23_s20 = int_to_ptr.hbm [resolvable:$true] %s22_s20 }
   0x2   :  { %s24_s22 = sshll.u32 %s975_s21, 4  ;;  %s976_s23 = smov 256   ;;  %s25_s22 = int_to_ptr.vmem [resolvable:$true] %s24_s22 }
   0x3   :  { %s977_s24 = smov 16  }
   0x4   :  { %30 = dma.hbm_to_vmem [thread:$0]  %s23_s20, 8192, %s25_s22, [#allocation3], %s976_s23, %s976_s23, %s977_s24  }
   0x5   :  { %971 = dma.done.wait [#allocation3], 8192  }
   0x6   :  { %972 = vsyncadd [#allocation3], 4294959104  ;;  %v978_v0 = vmov 0   ;;  %v69_v1 = vld [vmem:[%s1551_s1] sm:$0xff]  ;;  %v39_v2 = vld [vmem:[%s1550_s0 + $0x10] sm:$0xff]  ;;  %vm835_vm0 = vcmask 7168  }
   0x7   :  { %922 = vset.pattern.permute.xlu2 %v978_v0  ;;  %921 = vset.pattern.permute.xlu1 %v978_v0  ;;  %v37_v3 = vld [vmem:[%s1550_s0] sm:$0xff]  ;;  %v70_v4 = vld [vmem:[%s1551_s1 + $0x8] sm:$0xff]  ;;  %v40_v5 = vld [vmem:[%s1550_s0 + $0x18] sm:$0xff]  ;;  %s846_s15 = sshll.u32 %s1555_s5, 4  ;;  %s847_s15 = int_to_ptr.hbm [resolvable:$true] %s846_s15 }
   0x8   :  { %920 = vset.pattern.permute.xlu0 %v978_v0  ;;  %155 = vperm.xlu2 %922, %v69_v1   ;;  %v38_v6 = vld [vmem:[%s1550_s0 + $0x8] sm:$0xff]  ;;  %v41_v7 = vld [vmem:[%s1550_s0 + $0x20] sm:$0xff]  ;;  %v72_v8 = vld [vmem:[%s1551_s1 + $0x18] sm:$0xff] }
   0x9   :  { %121 = vperm.xlu1 %921, %v39_v2   ;;  %111 = vperm.xlu0 %920, %v37_v3   ;;  %v71_v9 = vld [vmem:[%s1551_s1 + $0x10] sm:$0xff]  ;;  %v44_v10 = vld [vmem:[%s1550_s0 + $0x38] sm:$0xff]  ;;  %v42_v12 = vld [vmem:[%s1550_s0 + $0x28] sm:$0xff] }
   0xa   :  { %v43_v11 = vld [vmem:[%s1550_s0 + $0x30] sm:$0xff]  ;;  %v74_v14 = vld [vmem:[%s1551_s1 + $0x28] sm:$0xff]  ;;  %v73_v15 = vld [vmem:[%s1551_s1 + $0x20] sm:$0xff] }
   0xb   :  { %v75_v13 = vld [vmem:[%s1551_s1 + $0x30] sm:$0xff]  ;;  %v46_v16 = vld [vmem:[%s1550_s0 + $0x48] sm:$0xff]  ;;  %v45_v17 = vld [vmem:[%s1550_s0 + $0x40] sm:$0xff] }
   0xc   :  { %v76_v18 = vld [vmem:[%s1551_s1 + $0x38] sm:$0xff]  ;;  %v77_v19 = vld [vmem:[%s1551_s1 + $0x40] sm:$0xff]  ;;  %v47_v21 = vld [vmem:[%s1550_s0 + $0x50] sm:$0xff] }
   0xd   :  { %v48_v20 = vld [vmem:[%s1550_s0 + $0x58] sm:$0xff]  ;;  %v79_v23 = vld [vmem:[%s1551_s1 + $0x50] sm:$0xff]  ;;  %v78_v24 = vld [vmem:[%s1551_s1 + $0x48] sm:$0xff] }
   0xe   :  { %v80_v22 = vld [vmem:[%s1551_s1 + $0x58] sm:$0xff]  ;;  %v51_v25 = vld [vmem:[%s1550_s0 + $0x70] sm:$0xff]  ;;  %v50_v26 = vld [vmem:[%s1550_s0 + $0x68] sm:$0xff] }
   0xf   :  { %v49_v27 = vld [vmem:[%s1550_s0 + $0x60] sm:$0xff]  ;;  %v82_v28 = vld [vmem:[%s1551_s1 + $0x68] sm:$0xff]  ;;  %v52_v30 = vld [vmem:[%s1550_s0 + $0x78] sm:$0xff] }
  0x10   :  { %160 = vperm.xlu2 %922, %v70_v4   ;;  %v81_v29 = vld [vmem:[%s1551_s1 + $0x60] sm:$0xff]  ;;  %v84_v32 = vld [vmem:[%s1551_s1 + $0x78] sm:$0xff]  ;;  %v83_v33 = vld [vmem:[%s1551_s1 + $0x70] sm:$0xff] }
  0x11   :  { %126 = vperm.xlu1 %921, %v40_v5   ;;  %116 = vperm.xlu0 %920, %v38_v6   ;;  %v53_v31 = vld [vmem:[%s1550_s0 + $0x80] sm:$0xff]  ;;  %v56_v34 = vld [vmem:[%s1550_s0 + $0x98] sm:$0xff]  ;;  %v55_v35 = vld [vmem:[%s1550_s0 + $0x90] sm:$0xff] }
  0x12   :  { %v54_v36 = vld [vmem:[%s1550_s0 + $0x88] sm:$0xff]  ;;  %v87_v38 = vld [vmem:[%s1551_s1 + $0x90] sm:$0xff]  ;;  %v85_v40 = vld [vmem:[%s1551_s1 + $0x80] sm:$0xff] }
  0x13   :  { %v86_v39 = vld [vmem:[%s1551_s1 + $0x88] sm:$0xff]  ;;  %v57_v43 = vld [vmem:[%s1550_s0 + $0xa0] sm:$0xff]  ;;  %v88_v44 = vld [vmem:[%s1551_s1 + $0x98] sm:$0xff] }
  0x14   :  { %v58_v42 = vld [vmem:[%s1550_s0 + $0xa8] sm:$0xff]  ;;  %v89_v46 = vld [vmem:[%s1551_s1 + $0xa0] sm:$0xff]  ;;  %v60_v47 = vld [vmem:[%s1550_s0 + $0xb8] sm:$0xff] }
  0x15   :  { %v59_v48 = vld [vmem:[%s1550_s0 + $0xb0] sm:$0xff]  ;;  %v145_v49 = vld [vmem:[#allocation2] sm:$0xff]  ;;  %v146_v50 = vld [vmem:[#allocation2 + $0x8] sm:$0xff] }
  0x16   :  { %v859_v51 = vld [vmem:[%s1552_s2 + $0x40] sm:$0xff]  ;;  %v860_v52 = vld [vmem:[%s1552_s2 + $0x48] sm:$0xff]  ;;  %v92_v0 = vld [vmem:[%s1551_s1 + $0xb8] sm:$0xff] }
  0x17   :  { %v101_v53 = vld [vmem:[%s1552_s2] sm:$0xff]  ;;  %v102_v54 = vld [vmem:[%s1552_s2 + $0x8] sm:$0xff]  ;;  %v91_v1 = vld [vmem:[%s1551_s1 + $0xb0] sm:$0xff] }
  0x18   :  { %200 = vperm.xlu2 %922, %v41_v7   ;;  %v90_v4 = vld [vmem:[%s1551_s1 + $0xa8] sm:$0xff]  ;;  %v147_v5 = vld [vmem:[#allocation2 + $0x10] sm:$0xff]  ;;  %v148_v6 = vld [vmem:[#allocation2 + $0x18] sm:$0xff] }
  0x19   :  { %170 = vperm.xlu1 %921, %v72_v8   ;;  %165 = vperm.xlu0 %920, %v71_v9   ;;  %v103_v9 = vld [vmem:[%s1552_s2 + $0x10] sm:$0xff] }
  0x20   :  { %215 = vperm.xlu2 %922, %v44_v10   ;;  %v104_v10 = vld [vmem:[%s1552_s2 + $0x18] sm:$0xff] }
  0x21   :  { %210 = vperm.xlu1 %921, %v43_v11   ;;  %205 = vperm.xlu0 %920, %v42_v12  }
  0x28   :  { %255 = vperm.xlu2 %922, %v75_v13  }
  0x29   :  { %250 = vperm.xlu1 %921, %v74_v14   ;;  %245 = vperm.xlu0 %920, %v73_v15  }
  0x30   :  { %295 = vperm.xlu2 %922, %v46_v16  }
  0x31   :  { %290 = vperm.xlu1 %921, %v45_v17   ;;  %260 = vperm.xlu0 %920, %v76_v18   ;;  %v63_v18 = vld [vmem:[%s1550_s0 + $0xd0] sm:$0xff] }
  0x38   :  { %335 = vperm.xlu2 %922, %v77_v19   ;;  %v62_v19 = vld [vmem:[%s1550_s0 + $0xc8] sm:$0xff] }
  0x39   :  { %305 = vperm.xlu1 %921, %v48_v20   ;;  %300 = vperm.xlu0 %920, %v47_v21  }
  0x40   :  { %350 = vperm.xlu2 %922, %v80_v22   ;;  %v61_v22 = vld [vmem:[%s1550_s0 + $0xc0] sm:$0xff] }
  0x41   :  { %345 = vperm.xlu1 %921, %v79_v23   ;;  %340 = vperm.xlu0 %920, %v78_v24   ;;  %v105_v23 = vld [vmem:[%s1552_s2 + $0x20] sm:$0xff]  ;;  %v107_v24 = vld [vmem:[%s1552_s2 + $0x30] sm:$0xff] }
  0x48   :  { %390 = vperm.xlu2 %922, %v51_v25   ;;  %v108_v25 = vld [vmem:[%s1552_s2 + $0x38] sm:$0xff] }
  0x49   :  { %385 = vperm.xlu1 %921, %v50_v26   ;;  %380 = vperm.xlu0 %920, %v49_v27   ;;  %v151_v26 = vld [vmem:[#allocation2 + $0x30] sm:$0xff]  ;;  %v152_v27 = vld [vmem:[#allocation2 + $0x38] sm:$0xff] }
  0x50   :  { %430 = vperm.xlu2 %922, %v82_v28   ;;  %v106_v28 = vld [vmem:[%s1552_s2 + $0x28] sm:$0xff] }
  0x51   :  { %425 = vperm.xlu1 %921, %v81_v29   ;;  %395 = vperm.xlu0 %920, %v52_v30   ;;  %v149_v29 = vld [vmem:[#allocation2 + $0x20] sm:$0xff]  ;;  %v150_v30 = vld [vmem:[#allocation2 + $0x28] sm:$0xff] }
  0x58   :  { %470 = vperm.xlu2 %922, %v53_v31   ;;  %v865_v31 = vld [vmem:[%s1552_s2 + $0x70] sm:$0xff] }
  0x59   :  { %440 = vperm.xlu1 %921, %v84_v32   ;;  %435 = vperm.xlu0 %920, %v83_v33   ;;  %v866_v32 = vld [vmem:[%s1552_s2 + $0x78] sm:$0xff] }
  0x60   :  { %485 = vperm.xlu2 %922, %v56_v34  }
  0x61   :  { %480 = vperm.xlu1 %921, %v55_v35   ;;  %475 = vperm.xlu0 %920, %v54_v36  }
  0x62   :  { %v156_v37 = vpop.permute.xlu2 %155 }
  0x63   :  { %v173_v55 = vmul.f32 %v156_v37, %v145_v49  ;;  %v174_v56 = vmul.f32 %v156_v37, %v146_v50  ;;  %v93_v49 = vld [vmem:[%s1551_s1 + $0xc0] sm:$0xff] }
  0x68   :  { %525 = vperm.xlu2 %922, %v87_v38  }
  0x69   :  { %520 = vperm.xlu1 %921, %v86_v39   ;;  %515 = vperm.xlu0 %920, %v85_v40  }
  0x6a   :  { %v161_v41 = vpop.permute.xlu2 %160 }
  0x6b   :  { %v175_v11 = vmul.f32 %v161_v41, %v147_v5  ;;  %v176_v12 = vmul.f32 %v161_v41, %v148_v6 }
  0x70   :  { %565 = vperm.xlu2 %922, %v58_v42  }
  0x71   :  { %560 = vperm.xlu1 %921, %v57_v43   ;;  %530 = vperm.xlu0 %920, %v88_v44  }
  0x72   :  { %v201_v45 = vpop.permute.xlu2 %200 }
  0x73   :  { %v218_v60 = vmul.f32 %v859_v51, %v201_v45  ;;  %v219_v61 = vmul.f32 %v860_v52, %v201_v45  ;;  %v64_v52 = vld [vmem:[%s1550_s0 + $0xd8] sm:$0xff] }
  0x78   :  { %605 = vperm.xlu2 %922, %v89_v46  }
  0x79   :  { %575 = vperm.xlu1 %921, %v60_v47   ;;  %570 = vperm.xlu0 %920, %v59_v48   ;;  %v94_v48 = vld [vmem:[%s1551_s1 + $0xc8] sm:$0xff] }
  0x7a   :  { %v216_v57 = vpop.permute.xlu2 %215 }
  0x7b   :  { %v122_v58 = vpop.permute.xlu1 %121  ;;  %v112_v59 = vpop.permute.xlu0 %111  ;;  %v224_v44 = vmul.f32 %v865_v31, %v216_v57  ;;  %v225_v45 = vmul.f32 %v866_v32, %v216_v57  ;;  %v861_v57 = vld [vmem:[%s1552_s2 + $0x50] sm:$0xff] }
  0x7c   :  { %v129_v62 = vmul.f32 %v112_v59, %v101_v53  ;;  %v130_v63 = vmul.f32 %v112_v59, %v102_v54  ;;  %v133_v40 = vmul.f32 %v122_v58, %v105_v23  ;;  %v134_v41 = vmul.f32 %v122_v58, %v106_v28  ;;  %v862_v58 = vld [vmem:[%s1552_s2 + $0x58] sm:$0xff]  ;;  %v239_v59 = vld [vmem:[#allocation2 + $0x60] sm:$0xff] }
  0x7e   :  { %v181_v2 = vadd.f32 %v173_v55, %v129_v62  ;;  %v182_v3 = vadd.f32 %v174_v56, %v130_v63  ;;  %v863_v55 = vld [vmem:[%s1552_s2 + $0x60] sm:$0xff]  ;;  %v864_v56 = vld [vmem:[%s1552_s2 + $0x68] sm:$0xff] }
  0x80   :  { %620 = vperm.xlu2 %922, %v92_v0   ;;  %v1172_v7 = vadd.f32 %v218_v60, %v181_v2  ;;  %v1174_v8 = vadd.f32 %v219_v61, %v182_v3  ;;  %v240_v60 = vld [vmem:[#allocation2 + $0x68] sm:$0xff] }
  0x81   :  { %615 = vperm.xlu1 %921, %v91_v1   ;;  %610 = vperm.xlu0 %920, %v90_v4  }
  0x82   :  { %v256_v13 = vpop.permute.xlu2 %255 }
  0x83   :  { %v127_v14 = vpop.permute.xlu1 %126  ;;  %v117_v15 = vpop.permute.xlu0 %116  ;;  %v267_v4 = vmul.f32 %v256_v13, %v239_v59  ;;  %v268_v5 = vmul.f32 %v256_v13, %v240_v60  ;;  %v237_v13 = vld [vmem:[#allocation2 + $0x50] sm:$0xff]  ;;  %v98_v59 = vld [vmem:[%s1551_s1 + $0xe8] sm:$0xff] }
  0x84   :  { %v131_v16 = vmul.f32 %v117_v15, %v103_v9  ;;  %v132_v17 = vmul.f32 %v117_v15, %v104_v10  ;;  %v135_v35 = vmul.f32 %v127_v14, %v107_v24  ;;  %v136_v36 = vmul.f32 %v127_v14, %v108_v25  ;;  %v65_v10 = vld [vmem:[%s1550_s0 + $0xe0] sm:$0xff]  ;;  %v95_v15 = vld [vmem:[%s1551_s1 + $0xd0] sm:$0xff] }
  0x86   :  { %v183_v20 = vadd.f32 %v175_v11, %v131_v16  ;;  %v184_v21 = vadd.f32 %v176_v12, %v132_v17  ;;  %v96_v11 = vld [vmem:[%s1551_s1 + $0xd8] sm:$0xff] }
  0x88   :  { %660 = vperm.xlu2 %922, %v63_v18   ;;  %v238_v18 = vld [vmem:[#allocation2 + $0x58] sm:$0xff] }
  0x89   :  { %655 = vperm.xlu1 %921, %v62_v19   ;;  %650 = vperm.xlu0 %920, %v61_v22   ;;  %v235_v19 = vld [vmem:[#allocation2 + $0x40] sm:$0xff]  ;;  %v236_v22 = vld [vmem:[#allocation2 + $0x48] sm:$0xff] }
  0x8a   :  { %v1209_v33 = vpop.permute.xlu2 %295 }
  0x8b   :  { %v171_v34 = vpop.permute.xlu1 %170  ;;  %v166_v39 = vpop.permute.xlu0 %165 }
  0x8c   :  { %v179_v37 = vmul.f32 %v171_v34, %v151_v26  ;;  %v180_v38 = vmul.f32 %v171_v34, %v152_v27  ;;  %v177_v42 = vmul.f32 %v166_v39, %v149_v29  ;;  %v178_v43 = vmul.f32 %v166_v39, %v150_v30  ;;  %v66_v39 = vld [vmem:[%s1550_s0 + $0xe8] sm:$0xff] }
  0x8e   :  { %v187_v46 = vadd.f32 %v179_v37, %v135_v35  ;;  %v188_v47 = vadd.f32 %v180_v38, %v136_v36  ;;  %v185_v50 = vadd.f32 %v177_v42, %v133_v40  ;;  %v186_v51 = vadd.f32 %v178_v43, %v134_v41  ;;  %v68_v35 = vld [vmem:[%s1550_s0 + $0xf8] sm:$0xff]  ;;  %v67_v36 = vld [vmem:[%s1550_s0 + $0xf0] sm:$0xff]  ;;  %v867_v41 = vld [vmem:[%s1552_s2 + $0x80] sm:$0xff] }
  0x8f   :  { %v242_v42 = vld [vmem:[#allocation2 + $0x78] sm:$0xff]  ;;  %v325_v43 = vld [vmem:[#allocation2 + $0x80] sm:$0xff] }
  0x90   :  { %v1220_v53 = vadd.f32 %v224_v44, %v187_v46  ;;  %v1222_v54 = vadd.f32 %v225_v45, %v188_v47  ;;  %700 = vperm.xlu2 %922, %v94_v48   ;;  %v326_v44 = vld [vmem:[#allocation2 + $0x88] sm:$0xff] }
  0x91   :  { %695 = vperm.xlu1 %921, %v93_v49   ;;  %665 = vperm.xlu0 %920, %v64_v52  }
  0x92   :  { %v336_v61 = vpop.permute.xlu2 %335 }
  0x93   :  { %v211_v62 = vpop.permute.xlu1 %210  ;;  %v206_v1 = vpop.permute.xlu0 %205  ;;  %v353_v52 = vmul.f32 %v336_v61, %v325_v43 }
  0x94   :  { %v222_v63 = vmul.f32 %v863_v55, %v211_v62  ;;  %v223_v0 = vmul.f32 %v864_v56, %v211_v62  ;;  %v220_v2 = vmul.f32 %v861_v57, %v206_v1  ;;  %v221_v3 = vmul.f32 %v862_v58, %v206_v1  ;;  %v99_v58 = vld [vmem:[%s1551_s1 + $0xf0] sm:$0xff] }
  0x95   :  { %v354_v55 = vmul.f32 %v336_v61, %v326_v44  ;;  %v873_v1 = vld [vmem:[%s1552_s2 + $0xb0] sm:$0xff] }
  0x96   :  { %v230_v6 = vadd.f32 %v222_v63, %v185_v50  ;;  %v231_v9 = vadd.f32 %v223_v0, %v186_v51  ;;  %v228_v12 = vadd.f32 %v220_v2, %v183_v20  ;;  %v229_v14 = vadd.f32 %v221_v3, %v184_v21  ;;  %v869_v20 = vld [vmem:[%s1552_s2 + $0x90] sm:$0xff]  ;;  %v870_v21 = vld [vmem:[%s1552_s2 + $0x98] sm:$0xff]  ;;  %v97_v63 = vld [vmem:[%s1551_s1 + $0xe0] sm:$0xff] }
  0x97   :  { %v310_v30 = vmul.f32 %v869_v20, %v1209_v33  ;;  %v311_v31 = vmul.f32 %v870_v21, %v1209_v33  ;;  %v872_v2 = vld [vmem:[%s1552_s2 + $0xa8] sm:$0xff]  ;;  %v331_v3 = vld [vmem:[#allocation2 + $0xb0] sm:$0xff]  ;;  %v100_v21 = vld [vmem:[%s1551_s1 + $0xf8] sm:$0xff] }
  0x98   :  { %v1245_v16 = vadd.f32 %v267_v4, %v230_v6  ;;  %v1247_v17 = vadd.f32 %v268_v5, %v231_v9  ;;  %740 = vperm.xlu2 %922, %v65_v10   ;;  %v332_v4 = vld [vmem:[#allocation2 + $0xb8] sm:$0xff]  ;;  %v877_v44 = vld [vmem:[%s1552_s2 + $0xd0] sm:$0xff] }
  0x99   :  { %710 = vperm.xlu1 %921, %v96_v11   ;;  %705 = vperm.xlu0 %920, %v95_v15  }
  0x9a   :  { %v351_v23 = vpop.permute.xlu2 %350 }
  0x9b   :  { %v251_v24 = vpop.permute.xlu1 %250  ;;  %v246_v27 = vpop.permute.xlu0 %245  ;;  %v359_v15 = vmul.f32 %v351_v23, %v331_v3  ;;  %v881_v3 = vld [vmem:[%s1552_s2 + $0xf0] sm:$0xff] }
  0x9c   :  { %v265_v25 = vmul.f32 %v251_v24, %v237_v13  ;;  %v266_v26 = vmul.f32 %v251_v24, %v238_v18  ;;  %v263_v28 = vmul.f32 %v246_v27, %v235_v19  ;;  %v264_v29 = vmul.f32 %v246_v27, %v236_v22  ;;  %v330_v27 = vld [vmem:[#allocation2 + $0xa8] sm:$0xff] }
  0x9d   :  { %v360_v13 = vmul.f32 %v351_v23, %v332_v4  ;;  %v879_v23 = vld [vmem:[%s1552_s2 + $0xe0] sm:$0xff]  ;;  %v882_v4 = vld [vmem:[%s1552_s2 + $0xf8] sm:$0xff] }
  0x9e   :  { %v273_v32 = vadd.f32 %v265_v25, %v228_v12  ;;  %v274_v34 = vadd.f32 %v266_v26, %v229_v14  ;;  %v271_v37 = vadd.f32 %v263_v28, %v1172_v7  ;;  %v272_v38 = vadd.f32 %v264_v29, %v1174_v8  ;;  %v868_v7 = vld [vmem:[%s1552_s2 + $0x88] sm:$0xff]  ;;  %v241_v8 = vld [vmem:[#allocation2 + $0x70] sm:$0xff]  ;;  %v329_v26 = vld [vmem:[#allocation2 + $0xa0] sm:$0xff] }
  0x9f   :  { %v327_v28 = vld [vmem:[#allocation2 + $0x90] sm:$0xff]  ;;  %v328_v29 = vld [vmem:[#allocation2 + $0x98] sm:$0xff] }
  0xa0   :  { %v1268_v40 = vadd.f32 %v310_v30, %v273_v32  ;;  %v1270_v33 = vadd.f32 %v311_v31, %v274_v34  ;;  %755 = vperm.xlu2 %922, %v68_v35  }
  0xa1   :  { %750 = vperm.xlu1 %921, %v67_v36   ;;  %745 = vperm.xlu0 %920, %v66_v39  }
  0xa2   :  { %v391_v45 = vpop.permute.xlu2 %390 }
  0xa3   :  { %v291_v46 = vpop.permute.xlu1 %290  ;;  %v261_v49 = vpop.permute.xlu0 %260 }
  0xa4   :  { %v308_v47 = vmul.f32 %v867_v41, %v291_v46  ;;  %v309_v48 = vmul.f32 %v868_v7, %v291_v46  ;;  %v269_v50 = vmul.f32 %v261_v49, %v241_v8  ;;  %v270_v51 = vmul.f32 %v261_v49, %v242_v42  ;;  %v878_v46 = vld [vmem:[%s1552_s2 + $0xd8] sm:$0xff] }
  0xa6   :  { %v316_v56 = vadd.f32 %v308_v47, %v271_v37  ;;  %v317_v57 = vadd.f32 %v309_v48, %v272_v38  ;;  %v277_v60 = vadd.f32 %v269_v50, %v1220_v53  ;;  %v278_v62 = vadd.f32 %v270_v51, %v1222_v54  ;;  %v874_v53 = vld [vmem:[%s1552_s2 + $0xb8] sm:$0xff]  ;;  %v871_v54 = vld [vmem:[%s1552_s2 + $0xa0] sm:$0xff] }
  0xa7   :  { %v402_v37 = vmul.f32 %v879_v23, %v391_v45  ;;  %v418_v47 = vld [vmem:[#allocation2 + $0xd8] sm:$0xff] }
  0xa8   :  { %v1289_v0 = vadd.f32 %v353_v52, %v316_v56  ;;  %v1291_v61 = vadd.f32 %v354_v55, %v317_v57  ;;  %795 = vperm.xlu2 %922, %v99_v58   ;;  %v890_v23 = vld [vmem:[%s1552_s2 + $0x138] sm:$0xff] }
  0xa9   :  { %790 = vperm.xlu1 %921, %v98_v59   ;;  %785 = vperm.xlu0 %920, %v97_v63  }
  0xaa   :  { %v431_v5 = vpop.permute.xlu2 %430 }
  0xab   :  { %v306_v6 = vpop.permute.xlu1 %305  ;;  %v301_v11 = vpop.permute.xlu0 %300  ;;  %v446_v58 = vmul.f32 %v431_v5, %v418_v47 }
  0xac   :  { %v314_v9 = vmul.f32 %v873_v1, %v306_v6  ;;  %v315_v10 = vmul.f32 %v874_v53, %v306_v6  ;;  %v312_v12 = vmul.f32 %v871_v54, %v301_v11  ;;  %v313_v14 = vmul.f32 %v872_v2, %v301_v11  ;;  %v415_v54 = vld [vmem:[#allocation2 + $0xc0] sm:$0xff]  ;;  %v416_v2 = vld [vmem:[#allocation2 + $0xc8] sm:$0xff] }
  0xae   :  { %v322_v18 = vadd.f32 %v314_v9, %v277_v60  ;;  %v323_v19 = vadd.f32 %v315_v10, %v278_v62  ;;  %v320_v22 = vadd.f32 %v312_v12, %v1245_v16  ;;  %v321_v20 = vadd.f32 %v313_v14, %v1247_v17  ;;  %v880_v16 = vld [vmem:[%s1552_s2 + $0xe8] sm:$0xff] }
  0xaf   :  { %v403_v38 = vmul.f32 %v880_v16, %v391_v45  ;;  %v875_v45 = vld [vmem:[%s1552_s2 + $0xc0] sm:$0xff] }
  0xb0   :  { %v367_v24 = vadd.f32 %v359_v15, %v322_v18  ;;  %v368_v25 = vadd.f32 %v360_v13, %v323_v19 }
  0xb1   :  { %800 = vperm.xlu0 %920, %v100_v21  }
  0xb2   :  { %v471_v17 = vpop.permute.xlu2 %470 }
  0xb3   :  { %v346_v30 = vpop.permute.xlu1 %345  ;;  %v341_v34 = vpop.permute.xlu0 %340 }
  0xb4   :  { %v357_v31 = vmul.f32 %v346_v30, %v329_v26  ;;  %v358_v32 = vmul.f32 %v346_v30, %v330_v27  ;;  %v355_v35 = vmul.f32 %v341_v34, %v327_v28  ;;  %v356_v36 = vmul.f32 %v341_v34, %v328_v29  ;;  %v421_v27 = vld [vmem:[#allocation2 + $0xf0] sm:$0xff]  ;;  %v422_v28 = vld [vmem:[#allocation2 + $0xf8] sm:$0xff] }
  0xb5   :  { %v889_v29 = vld [vmem:[%s1552_s2 + $0x130] sm:$0xff] }
  0xb6   :  { %v365_v39 = vadd.f32 %v357_v31, %v320_v22  ;;  %v366_v41 = vadd.f32 %v358_v32, %v321_v20  ;;  %v363_v7 = vadd.f32 %v355_v35, %v1268_v40  ;;  %v364_v8 = vadd.f32 %v356_v36, %v1270_v33  ;;  %v876_v40 = vld [vmem:[%s1552_s2 + $0xc8] sm:$0xff]  ;;  %v417_v33 = vld [vmem:[#allocation2 + $0xd0] sm:$0xff] }
  0xb7   :  { %v445_v57 = vmul.f32 %v431_v5, %v417_v33 }
  0xb8   :  { %v1318_v42 = vadd.f32 %v402_v37, %v365_v39  ;;  %v1320_v43 = vadd.f32 %v403_v38, %v366_v41 }
  0xba   :  { %v486_v48 = vpop.permute.xlu2 %485 }
  0xbb   :  { %v386_v49 = vpop.permute.xlu1 %385  ;;  %v381_v52 = vpop.permute.xlu0 %380  ;;  %v495_v32 = vmul.f32 %v890_v23, %v486_v48 }
  0xbc   :  { %v400_v50 = vmul.f32 %v877_v44, %v386_v49  ;;  %v401_v51 = vmul.f32 %v878_v46, %v386_v49  ;;  %v398_v55 = vmul.f32 %v875_v45, %v381_v52  ;;  %v399_v56 = vmul.f32 %v876_v40, %v381_v52  ;;  %v419_v52 = vld [vmem:[#allocation2 + $0xe0] sm:$0xff] }
  0xbe   :  { %v408_v59 = vadd.f32 %v400_v50, %v363_v7  ;;  %v409_v60 = vadd.f32 %v401_v51, %v364_v8  ;;  %v406_v62 = vadd.f32 %v398_v55, %v1289_v0  ;;  %v407_v63 = vadd.f32 %v399_v56, %v1291_v61  ;;  %v883_v0 = vld [vmem:[%s1552_s2 + $0x100] sm:$0xff]  ;;  %v884_v61 = vld [vmem:[%s1552_s2 + $0x108] sm:$0xff] }
  0xbf   :  { %v488_v15 = vmul.f32 %v883_v0, %v471_v17  ;;  %v489_v13 = vmul.f32 %v884_v61, %v471_v17  ;;  %v420_v56 = vld [vmem:[#allocation2 + $0xe8] sm:$0xff]  ;;  %v507_v61 = vld [vmem:[#allocation2 + $0x110] sm:$0xff] }
  0xc0   :  { %v1336_v1 = vadd.f32 %v445_v57, %v408_v59  ;;  %v1338_v53 = vadd.f32 %v446_v58, %v409_v60  ;;  %v887_v57 = vld [vmem:[%s1552_s2 + $0x120] sm:$0xff]  ;;  %v888_v60 = vld [vmem:[%s1552_s2 + $0x128] sm:$0xff] }
  0xc2   :  { %v1352_v5 = vpop.permute.xlu2 %525 }
  0xc3   :  { %v426_v6 = vpop.permute.xlu1 %425  ;;  %v396_v11 = vpop.permute.xlu0 %395 }
  0xc4   :  { %v443_v9 = vmul.f32 %v426_v6, %v415_v54  ;;  %v444_v10 = vmul.f32 %v426_v6, %v416_v2  ;;  %v404_v12 = vmul.f32 %v881_v3, %v396_v11  ;;  %v405_v14 = vmul.f32 %v882_v4, %v396_v11  ;;  %v886_v54 = vld [vmem:[%s1552_s2 + $0x118] sm:$0xff]  ;;  %v509_v2 = vld [vmem:[#allocation2 + $0x120] sm:$0xff]  ;;  %v510_v4 = vld [vmem:[#allocation2 + $0x128] sm:$0xff] }
  0xc5   :  { %v508_v6 = vld [vmem:[#allocation2 + $0x118] sm:$0xff] }
  0xc6   :  { %v451_v18 = vadd.f32 %v443_v9, %v406_v62  ;;  %v452_v19 = vadd.f32 %v444_v10, %v407_v63  ;;  %v412_v22 = vadd.f32 %v404_v12, %v367_v24  ;;  %v413_v20 = vadd.f32 %v405_v14, %v368_v25  ;;  %v885_v63 = vld [vmem:[%s1552_s2 + $0x110] sm:$0xff]  ;;  %v894_v10 = vld [vmem:[%s1552_s2 + $0x158] sm:$0xff] }
  0xc7   :  { %v494_v25 = vmul.f32 %v889_v29, %v486_v48  ;;  %v893_v9 = vld [vmem:[%s1552_s2 + $0x150] sm:$0xff]  ;;  %v538_v29 = vmul.f32 %v1352_v5, %v510_v4 }
  0xc8   :  { %v1354_v21 = vadd.f32 %v488_v15, %v451_v18  ;;  %v1356_v26 = vadd.f32 %v489_v13, %v452_v19  ;;  %v505_v15 = vld [vmem:[#allocation2 + $0x100] sm:$0xff]  ;;  %v537_v18 = vmul.f32 %v1352_v5, %v509_v2  ;;  %v892_v5 = vld [vmem:[%s1552_s2 + $0x148] sm:$0xff] }
  0xca   :  { %v566_v17 = vpop.permute.xlu2 %565 }
  0xcb   :  { %v441_v16 = vpop.permute.xlu1 %440  ;;  %v436_v24 = vpop.permute.xlu0 %435 }
  0xcc   :  { %v449_v30 = vmul.f32 %v441_v16, %v421_v27  ;;  %v450_v31 = vmul.f32 %v441_v16, %v422_v28  ;;  %v447_v59 = vmul.f32 %v436_v24, %v419_v52  ;;  %v448_v62 = vmul.f32 %v436_v24, %v420_v56  ;;  %v506_v27 = vld [vmem:[#allocation2 + $0x108] sm:$0xff]  ;;  %v599_v52 = vld [vmem:[#allocation2 + $0x160] sm:$0xff] }
  0xcd   :  { %v580_v24 = vmul.f32 %v893_v9, %v566_v17  ;;  %v600_v56 = vld [vmem:[#allocation2 + $0x168] sm:$0xff] }
  0xce   :  { %v457_v34 = vadd.f32 %v449_v30, %v412_v22  ;;  %v458_v35 = vadd.f32 %v450_v31, %v413_v20  ;;  %v455_v11 = vadd.f32 %v447_v59, %v1318_v42  ;;  %v456_v19 = vadd.f32 %v448_v62, %v1320_v43  ;;  %v595_v22 = vld [vmem:[#allocation2 + $0x140] sm:$0xff]  ;;  %v596_v20 = vld [vmem:[#allocation2 + $0x148] sm:$0xff]  ;;  %v601_v59 = vld [vmem:[#allocation2 + $0x170] sm:$0xff] }
  0xcf   :  { %v891_v42 = vld [vmem:[%s1552_s2 + $0x140] sm:$0xff]  ;;  %v896_v43 = vld [vmem:[%s1552_s2 + $0x168] sm:$0xff] }
  0xd0   :  { %v1364_v36 = vadd.f32 %v494_v25, %v457_v34  ;;  %v1366_v37 = vadd.f32 %v495_v32, %v458_v35  ;;  %v895_v31 = vld [vmem:[%s1552_s2 + $0x160] sm:$0xff]  ;;  %v581_v25 = vmul.f32 %v894_v10, %v566_v17  ;;  %v511_v17 = vld [vmem:[#allocation2 + $0x130] sm:$0xff] }
  0xd2   :  { %v606_v41 = vpop.permute.xlu2 %605 }
  0xd3   :  { %v481_v38 = vpop.permute.xlu1 %480  ;;  %v476_v39 = vpop.permute.xlu0 %475  ;;  %v623_v35 = vmul.f32 %v606_v41, %v595_v22  ;;  %v598_v22 = vld [vmem:[#allocation2 + $0x158] sm:$0xff] }
  0xd4   :  { %v492_v3 = vmul.f32 %v887_v57, %v481_v38  ;;  %v493_v0 = vmul.f32 %v888_v60, %v481_v38  ;;  %v490_v12 = vmul.f32 %v885_v63, %v476_v39  ;;  %v491_v14 = vmul.f32 %v886_v54, %v476_v39  ;;  %v602_v60 = vld [vmem:[#allocation2 + $0x178] sm:$0xff] }
  0xd5   :  { %v624_v57 = vmul.f32 %v606_v41, %v596_v20  ;;  %v903_v41 = vld [vmem:[%s1552_s2 + $0x1a0] sm:$0xff] }
  0xd6   :  { %v500_v23 = vadd.f32 %v492_v3, %v455_v11  ;;  %v501_v32 = vadd.f32 %v493_v0, %v456_v19  ;;  %v498_v38 = vadd.f32 %v490_v12, %v1336_v1  ;;  %v499_v39 = vadd.f32 %v491_v14, %v1338_v53  ;;  %v512_v1 = vld [vmem:[#allocation2 + $0x138] sm:$0xff]  ;;  %v597_v19 = vld [vmem:[#allocation2 + $0x150] sm:$0xff] }
  0xd7   :  { %v898_v12 = vld [vmem:[%s1552_s2 + $0x178] sm:$0xff] }
  0xda   :  { %v1368_v44 = vpop.permute.xlu2 %620 }
  0xdb   :  { %v521_v7 = vpop.permute.xlu1 %520  ;;  %v516_v8 = vpop.permute.xlu0 %515  ;;  %v1444_v10 = vmul.f32 %v1368_v44, %v602_v60 }
  0xdc   :  { %v535_v16 = vmul.f32 %v521_v7, %v507_v61  ;;  %v536_v30 = vmul.f32 %v521_v7, %v508_v6  ;;  %v533_v34 = vmul.f32 %v516_v8, %v505_v15  ;;  %v534_v7 = vmul.f32 %v516_v8, %v506_v27 }
  0xdd   :  { %v545_v61 = vadd.f32 %v537_v18, %v500_v23  ;;  %v546_v8 = vadd.f32 %v538_v29, %v501_v32 }
  0xde   :  { %v543_v3 = vadd.f32 %v535_v16, %v498_v38  ;;  %v544_v4 = vadd.f32 %v536_v30, %v499_v39  ;;  %v541_v53 = vadd.f32 %v533_v34, %v1354_v21  ;;  %v897_v21 = vld [vmem:[%s1552_s2 + $0x170] sm:$0xff]  ;;  %v689_v30 = vld [vmem:[#allocation2 + $0x1a0] sm:$0xff] }
  0xe0   :  { %v588_v23 = vadd.f32 %v580_v24, %v543_v3  ;;  %v589_v16 = vadd.f32 %v581_v25, %v544_v4  ;;  %v899_v24 = vld [vmem:[%s1552_s2 + $0x180] sm:$0xff] }
  0xe1   :  { %v779_v3 = vld [vmem:[#allocation2 + $0x1e0] sm:$0xff] }
  0xe2   :  { %v1374_v40 = vpop.permute.xlu2 %660 }
  0xe3   :  { %v1370_v46 = vpop.permute.xlu1 %560  ;;  %v1372_v45 = vpop.permute.xlu0 %530  ;;  %v672_v27 = vmul.f32 %v903_v41, %v1374_v40  ;;  %v686_v41 = vld [vmem:[#allocation2 + $0x188] sm:$0xff] }
  0xe4   :  { %v578_v62 = vmul.f32 %v891_v42, %v1370_v46  ;;  %v579_v0 = vmul.f32 %v892_v5, %v1370_v46  ;;  %v542_v46 = vadd.f32 %v534_v7, %v1356_v26  ;;  %v539_v11 = vmul.f32 %v1372_v45, %v511_v17  ;;  %v690_v42 = vld [vmem:[#allocation2 + $0x1a8] sm:$0xff]  ;;  %v902_v5 = vld [vmem:[%s1552_s2 + $0x198] sm:$0xff] }
  0xe5   :  { %v540_v15 = vmul.f32 %v1372_v45, %v512_v1  ;;  %v901_v45 = vld [vmem:[%s1552_s2 + $0x190] sm:$0xff] }
  0xe6   :  { %v587_v29 = vadd.f32 %v579_v0, %v542_v46  ;;  %v547_v38 = vadd.f32 %v539_v11, %v1364_v36  ;;  %v688_v46 = vld [vmem:[#allocation2 + $0x198] sm:$0xff] }
  0xe7   :  { %v548_v7 = vadd.f32 %v540_v15, %v1366_v37  ;;  %v912_v37 = vld [vmem:[%s1552_s2 + $0x1e8] sm:$0xff] }
  0xea   :  { %v1380_v49 = vpop.permute.xlu2 %700 }
  0xeb   :  { %v1376_v33 = vpop.permute.xlu1 %575  ;;  %v571_v47 = vpop.permute.xlu0 %570 }
  0xec   :  { %v582_v63 = vmul.f32 %v895_v31, %v571_v47  ;;  %v583_v54 = vmul.f32 %v896_v43, %v571_v47  ;;  %v1441_v47 = vmul.f32 %v1368_v44, %v601_v59  ;;  %v586_v44 = vadd.f32 %v578_v62, %v541_v53  ;;  %v685_v59 = vld [vmem:[#allocation2 + $0x180] sm:$0xff] }
  0xed   :  { %v584_v31 = vmul.f32 %v897_v21, %v1376_v33  ;;  %v585_v43 = vmul.f32 %v898_v12, %v1376_v33 }
  0xee   :  { %v590_v26 = vadd.f32 %v582_v63, %v545_v61  ;;  %v591_v18 = vadd.f32 %v583_v54, %v546_v8  ;;  %v632_v63 = vadd.f32 %v624_v57, %v587_v29  ;;  %v780_v57 = vld [vmem:[#allocation2 + $0x1e8] sm:$0xff] }
  0xef   :  { %v593_v54 = vadd.f32 %v585_v43, %v548_v7  ;;  %v777_v7 = vld [vmem:[#allocation2 + $0x1d0] sm:$0xff] }
  0xf2   :  { %v1391_v58 = vpop.permute.xlu2 %740 }
  0xf3   :  { %v1378_v48 = vpop.permute.xlu1 %615  ;;  %v1382_v50 = vpop.permute.xlu0 %610 }
  0xf4   :  { %v627_v6 = vmul.f32 %v1378_v48, %v599_v52  ;;  %v628_v9 = vmul.f32 %v1378_v48, %v600_v56  ;;  %v904_v48 = vld [vmem:[%s1552_s2 + $0x1a8] sm:$0xff]  ;;  %v625_v33 = vmul.f32 %v1382_v50, %v597_v19  ;;  %v626_v39 = vmul.f32 %v1382_v50, %v598_v22  ;;  %v911_v50 = vld [vmem:[%s1552_s2 + $0x1e0] sm:$0xff]  ;;  %v910_v22 = vld [vmem:[%s1552_s2 + $0x1d8] sm:$0xff] }
  0xf5   :  { %v673_v25 = vmul.f32 %v904_v48, %v1374_v40  ;;  %v631_v52 = vadd.f32 %v623_v35, %v586_v44  ;;  %v900_v56 = vld [vmem:[%s1552_s2 + $0x188] sm:$0xff]  ;;  %v592_v35 = vadd.f32 %v584_v31, %v547_v38 }
  0xf6   :  { %v635_v32 = vadd.f32 %v627_v6, %v590_v26  ;;  %v636_v34 = vadd.f32 %v628_v9, %v591_v18  ;;  %v633_v61 = vadd.f32 %v625_v33, %v588_v23  ;;  %v634_v53 = vadd.f32 %v626_v39, %v589_v16  ;;  %v687_v9 = vld [vmem:[#allocation2 + $0x190] sm:$0xff]  ;;  %v908_v31 = vld [vmem:[%s1552_s2 + $0x1c8] sm:$0xff] }
  0xf7   :  { %v637_v33 = vadd.f32 %v1441_v47, %v592_v35  ;;  %v833_v39 = vld [vmem:[%s1554_s4 + $0x10] sm:$0xff] }
  0xf8   :  { %v680_v0 = vadd.f32 %v672_v27, %v635_v32  ;;  %v681_v1 = vadd.f32 %v673_v25, %v636_v34  ;;  %v905_v34 = vld [vmem:[%s1552_s2 + $0x1b0] sm:$0xff] }
  0xfa   :  { %v1431_v2 = vpop.permute.xlu2 %755 }
  0xfb   :  { %v1384_v51 = vpop.permute.xlu1 %655  ;;  %v1386_v55 = vpop.permute.xlu0 %650 }
  0xfc   :  { %v670_v17 = vmul.f32 %v901_v45, %v1384_v51  ;;  %v671_v40 = vmul.f32 %v902_v5, %v1384_v51  ;;  %v668_v36 = vmul.f32 %v899_v24, %v1386_v55  ;;  %v669_v51 = vmul.f32 %v900_v56, %v1386_v55  ;;  %v909_v55 = vld [vmem:[%s1552_s2 + $0x1d0] sm:$0xff] }
  0xfd   :  { %v691_v45 = vld [vmem:[#allocation2 + $0x1b0] sm:$0xff] }
  0xfe   :  { %v678_v15 = vadd.f32 %v670_v17, %v633_v61  ;;  %v679_v26 = vadd.f32 %v671_v40, %v634_v53  ;;  %v676_v18 = vadd.f32 %v668_v36, %v631_v52  ;;  %v677_v43 = vadd.f32 %v669_v51, %v632_v63  ;;  %v778_v52 = vld [vmem:[#allocation2 + $0x1d8] sm:$0xff]  ;;  %v775_v40 = vld [vmem:[#allocation2 + $0x1c0] sm:$0xff]  ;;  %v776_v63 = vld [vmem:[#allocation2 + $0x1c8] sm:$0xff] }
  0xff   :  { %v759_v36 = vmul.f32 %v908_v31, %v1391_v58 }
 0x102   :  { %v796_v4 = vpop.permute.xlu2 %795 }
 0x103   :  { %v1409_v13 = vpop.permute.xlu1 %695  ;;  %v1413_v28 = vpop.permute.xlu0 %665  ;;  %v807_v19 = vmul.f32 %v796_v4, %v779_v3  ;;  %v808_v27 = vmul.f32 %v796_v4, %v780_v57 }
 0x104   :  { %v713_v8 = vmul.f32 %v1409_v13, %v685_v59  ;;  %v714_v29 = vmul.f32 %v1409_v13, %v686_v41  ;;  %v906_v13 = vld [vmem:[%s1552_s2 + $0x1b8] sm:$0xff]  ;;  %v638_v59 = vadd.f32 %v1444_v10, %v593_v54  ;;  %v674_v47 = vmul.f32 %v905_v34, %v1413_v28 }
 0x106   :  { %v721_v32 = vadd.f32 %v713_v8, %v676_v18  ;;  %v722_v56 = vadd.f32 %v714_v29, %v677_v43 }
 0x108   :  { %v767_v41 = vadd.f32 %v759_v36, %v722_v56 }
 0x10b   :  { %v1454_v14 = vpop.permute.xlu1 %710  ;;  %v706_v20 = vpop.permute.xlu0 %705 }
 0x10c   :  { %v717_v60 = vmul.f32 %v706_v20, %v689_v30  ;;  %v718_v62 = vmul.f32 %v706_v20, %v690_v42  ;;  %v907_v20 = vld [vmem:[%s1552_s2 + $0x1c0] sm:$0xff]  ;;  %v715_v30 = vmul.f32 %v1380_v49, %v687_v9  ;;  %v716_v42 = vmul.f32 %v1380_v49, %v688_v46  ;;  %v913_v46 = vld [vmem:[%s1552_s2 + $0x1f0] sm:$0xff] }
 0x10d   :  { %v758_v49 = vmul.f32 %v907_v20, %v1391_v58 }
 0x10e   :  { %v725_v11 = vadd.f32 %v717_v60, %v680_v0  ;;  %v726_v21 = vadd.f32 %v718_v62, %v681_v1  ;;  %v692_v60 = vld [vmem:[#allocation2 + $0x1b8] sm:$0xff]  ;;  %v723_v62 = vadd.f32 %v715_v30, %v678_v15  ;;  %v724_v17 = vadd.f32 %v716_v42, %v679_v26 }
 0x10f   :  { %v766_v35 = vadd.f32 %v758_v49, %v721_v32  ;;  %v719_v1 = vmul.f32 %v1454_v14, %v691_v45  ;;  %v720_v61 = vmul.f32 %v1454_v14, %v692_v60  ;;  %v914_v14 = vld [vmem:[%s1552_s2 + $0x1f8] sm:$0xff]  ;;  %v764_v26 = vmul.f32 %v913_v46, %v1431_v2  ;;  %s979_s2 = smov [#allocation5]  }
 0x110   :  { %v782_v15 = vld [vmem:[#allocation2 + $0x1f8] sm:$0xff]  ;;  %v765_v18 = vmul.f32 %v914_v14, %v1431_v2  ;;  %s844_s13 = sshll.u32 %s979_s2, 4  ;;  %s845_s13 = int_to_ptr.vmem [resolvable:$true] %s844_s13 }
 0x111   :  { %v834_v2 = vld [vmem:[%s1554_s4 + $0x18] sm:$0xff] }
 0x113   :  { %v751_v6 = vpop.permute.xlu1 %750  ;;  %v746_v44 = vpop.permute.xlu0 %745 }
 0x114   :  { %v762_v12 = vmul.f32 %v911_v50, %v751_v6  ;;  %v763_v48 = vmul.f32 %v912_v37, %v751_v6  ;;  %v760_v25 = vmul.f32 %v909_v55, %v746_v44  ;;  %v761_v38 = vmul.f32 %v910_v22, %v746_v44  ;;  %v832_v6 = vld [vmem:[%s1554_s4 + $0x8] sm:$0xff]  ;;  %v781_v44 = vld [vmem:[#allocation2 + $0x1f0] sm:$0xff] }
 0x115   :  { %v675_v50 = vmul.f32 %v906_v13, %v1413_v28  ;;  %v682_v28 = vadd.f32 %v674_v47, %v637_v33 }
 0x116   :  { %v770_v23 = vadd.f32 %v762_v12, %v725_v11  ;;  %v771_v16 = vadd.f32 %v763_v48, %v726_v21  ;;  %v768_v3 = vadd.f32 %v760_v25, %v723_v62  ;;  %v769_v4 = vadd.f32 %v761_v38, %v724_v17  ;;  %v831_v48 = vld [vmem:[%s1554_s4] sm:$0xff] }
 0x117   :  { %v683_v8 = vadd.f32 %v675_v50, %v638_v59  ;;  %v727_v21 = vadd.f32 %v719_v1, %v682_v28 }
 0x118   :  { %v815_v5 = vadd.f32 %v807_v19, %v770_v23  ;;  %v816_v24 = vadd.f32 %v808_v27, %v771_v16 }
 0x119   :  { %v728_v12 = vadd.f32 %v720_v61, %v683_v8  ;;  %v772_v55 = vadd.f32 %v764_v26, %v727_v21 }
 0x11a   :  { %823 = vst [vmem:[#allocation5 + $0x20] sm:$0xff] %v815_v5 }
 0x11b   :  { %824 = vst [vmem:[#allocation5 + $0x28] sm:$0xff] %v816_v24  ;;  %v791_v37 = vpop.permute.xlu1 %790  ;;  %v786_v0 = vpop.permute.xlu0 %785  ;;  %v773_v22 = vadd.f32 %v765_v18, %v728_v12 }
 0x11c   :  { %838 = vst.msk [vmem:[#allocation5 + $0x20] sm:$0xff] %vm835_vm0, %v833_v39  ;;  %v805_v10 = vmul.f32 %v791_v37, %v777_v7  ;;  %v806_v54 = vmul.f32 %v791_v37, %v778_v52  ;;  %v803_v53 = vmul.f32 %v786_v0, %v775_v40  ;;  %v804_v58 = vmul.f32 %v786_v0, %v776_v63 }
 0x11e   :  { %v813_v51 = vadd.f32 %v805_v10, %v768_v3  ;;  %v814_v57 = vadd.f32 %v806_v54, %v769_v4  ;;  %v811_v9 = vadd.f32 %v803_v53, %v766_v35  ;;  %v812_v11 = vadd.f32 %v804_v58, %v767_v41 }
 0x120   :  { %821 = vst [vmem:[#allocation5 + $0x10] sm:$0xff] %v813_v51 }
 0x121   :  { %822 = vst [vmem:[#allocation5 + $0x18] sm:$0xff] %v814_v57 }
 0x122   :  { %837 = vst.msk [vmem:[#allocation5 + $0x10] sm:$0xff] %vm835_vm0, %v832_v6 }
 0x123   :  { %819 = vst [vmem:[#allocation5] sm:$0xff] %v811_v9  ;;  %v801_v19 = vpop.permute.xlu0 %800 }
 0x124   :  { %820 = vst [vmem:[#allocation5 + $0x8] sm:$0xff] %v812_v11  ;;  %v809_v20 = vmul.f32 %v801_v19, %v781_v44  ;;  %v810_v27 = vmul.f32 %v801_v19, %v782_v15 }
 0x125   :  { %836 = vst.msk [vmem:[#allocation5] sm:$0xff] %vm835_vm0, %v831_v48 }
 0x126   :  { %v817_v29 = vadd.f32 %v809_v20, %v772_v55  ;;  %v818_v23 = vadd.f32 %v810_v27, %v773_v22 }
 0x128   :  { %825 = vst [vmem:[#allocation5 + $0x30] sm:$0xff] %v817_v29 }
 0x129   :  { %826 = vst [vmem:[#allocation5 + $0x38] sm:$0xff] %v818_v23 }
 0x12a   :  { %839 = vst.msk [vmem:[#allocation5 + $0x30] sm:$0xff] %vm835_vm0, %v834_v2 }
 0x12b   :  { %852 = dma.vmem_to_hbm [thread:$0]  %s845_s13, 1024, %s847_s15, [#allocation4], %s976_s23, %s976_s23, %s977_s24  }
 0x12c   :  { %973 = dma.done.wait [#allocation4], 1024  }
 0x12d   :  { %974 = vsyncadd [#allocation4], 4294966272 }
 0x12e   :  { %857 = vsyncpa [#allocation3], 1 }
 0x12f   :  { %858 = vsyncpa [#allocation4], 1 }

</bundles_post_ra>
